<compile_context>
chip_gen: v6e
topology: v6e:2x2x1
jax: 0.10.0
libtpu: 0.0.40
codegen_flags: <defaults>
</compile_context>

<pallas_src>
import jax
import jax.numpy as jnp
from jax import lax
from jax.experimental import pallas as pl
from jax.experimental.pallas import tpu as pltpu

_VMEM_LIMIT = 32 * 1024 * 1024     # safe scoped-VMEM budget on v5e / v6e / v7x
_TM = 2048                         # row tile for the 1x1 heads (M = B*Ho*Wo)


def _round_up(x, m):
    return ((x + m - 1) // m) * m


def _compiler_params():
    return pltpu.CompilerParams(
        dimension_semantics=("parallel",),
        vmem_limit_bytes=_VMEM_LIMIT,
    )


# ----------------------------- kernel builders ------------------------------

def _make_conv_prelu_kernel(kh, kw):
    """Generic valid 3x3 conv + bias + PReLU; one image per grid step.

    x_ref : (1, H, W, Cin)      bf16
    w_ref : (kh*kw, Cin, Cout)  bf16   (index di*kw + dj -> (Cin, Cout))
    ba_ref: (2, Cout)           f32    (row 0 = bias, row 1 = PReLU alpha)
    o_ref : (1, Ho, Wo, Cout)
    """
    def kernel(x_ref, w_ref, ba_ref, o_ref):
        _, Ho, Wo, Cout = o_ref.shape
        bias = ba_ref[0:1, :]
        alpha = ba_ref[1:2, :]

        def row(h, carry):
            acc = jnp.zeros((Wo, Cout), jnp.float32)
            for di in range(kh):
                xr = x_ref[0, pl.ds(h + di, 1)][0]          # (W, Cin)
                for dj in range(kw):
                    acc = acc + jnp.dot(xr[dj:dj + Wo, :], w_ref[di * kw + dj],
                                        preferred_element_type=jnp.float32)
            acc = acc + bias
            acc = jnp.where(acc > 0, acc, alpha * acc)
            o_ref[0, pl.ds(h, 1)] = acc[None].astype(o_ref.dtype)
            return carry

        lax.fori_loop(0, Ho, row, 0)

    return kernel


def _make_conv1_pool_kernel(H, W):
    """conv1 (3x3 valid) + bias + PReLU + MaxPool2d(2,2,ceil) fused.

    Inputs are the image split by column parity (built by the wrapper):
      xe_ref: (1, H, ceil(W/2),  Cin)  even input columns (bf16)
      xo_ref: (1, H, floor(W/2), Cin)  odd  input columns (bf16)
      w_ref : (9, Cin, Cout) bf16 ; ba_ref: (2, Cout) f32
      o_ref : (1, Hp, Wp, Cout)
    Conv columns of a given output parity only ever read contiguous slices of
    xe/xo, so no strided or reshaped accesses are needed in the kernel.
    """
    Ho, Wo = H - 2, W - 2
    Hp, Wp = (Ho + 1) // 2, (Wo + 1) // 2
    n_o = Wo // 2                                  # number of odd conv columns

    def kernel(xe_ref, xo_ref, w_ref, ba_ref, o_ref):
        Cout = o_ref.shape[-1]
        bias = ba_ref[0:1, :]
        alpha = ba_ref[1:2, :]

        def conv_row(h):
            """PReLU(conv row h), split into even / odd output columns."""
            acc_e = jnp.zeros((Wp, Cout), jnp.float32)
            acc_o = jnp.zeros((n_o, Cout), jnp.float32) if n_o else None
            for di in range(3):
                re = xe_ref[0, pl.ds(h + di, 1)][0]        # (We,  Cin)
                ro = xo_ref[0, pl.ds(h + di, 1)][0]        # (Wod, Cin)
                w0, w1, w2 = (w_ref[3 * di + 0], w_ref[3 * di + 1],
                              w_ref[3 * di + 2])
                # even output col 2j reads input cols 2j, 2j+1, 2j+2
                acc_e = acc_e + jnp.dot(re[0:Wp], w0,
                                        preferred_element_type=jnp.float32)
                acc_e = acc_e + jnp.dot(ro[0:Wp], w1,
                                        preferred_element_type=jnp.float32)
                acc_e = acc_e + jnp.dot(re[1:Wp + 1], w2,
                                        preferred_element_type=jnp.float32)
                if n_o:
                    # odd output col 2j+1 reads input cols 2j+1, 2j+2, 2j+3
                    acc_o = acc_o + jnp.dot(ro[0:n_o], w0,
                                            preferred_element_type=jnp.float32)
                    acc_o = acc_o + jnp.dot(re[1:n_o + 1], w1,
                                            preferred_element_type=jnp.float32)
                    acc_o = acc_o + jnp.dot(ro[1:n_o + 1], w2,
                                            preferred_element_type=jnp.float32)

            def act(v):
                v = v + bias
                return jnp.where(v > 0, v, alpha * v)

            return act(acc_e), (act(acc_o) if n_o else None)

        def body(hp, carry):
            h0 = 2 * hp
            h1 = jnp.minimum(h0 + 1, Ho - 1)   # odd-Ho edge: max(row, row) = row
            e0, o0 = conv_row(h0)
            e1, o1 = conv_row(h1)
            ev = jnp.maximum(e0, e1)                       # (Wp,  Cout)
            if n_o:
                od = jnp.maximum(o0, o1)                   # (n_o, Cout)
                if n_o == Wp:
                    pooled = jnp.maximum(ev, od)
                else:   # odd Wo: last pooled column only has an even conv col
                    pooled = jnp.concatenate(
                        [jnp.maximum(ev[:n_o], od), ev[n_o:]], axis=0)
            else:
                pooled = ev
            o_ref[0, pl.ds(hp, 1)] = pooled[None].astype(o_ref.dtype)
            return carry

        lax.fori_loop(0, Hp, body, 0)

    return kernel


def _heads_kernel(x_ref, w_ref, b_ref, o_ref):
    """Fused conv4_1 (2-class softmax) + conv4_2 (bbox regression), one dot.

    x_ref: (tm, 32) f32 ; w_ref: (32, 6) f32 ; b_ref: (1, 6) f32
    o_ref: (tm, 6) f32  -- cols 0:2 = class probabilities, cols 2:6 = bbox.
    """
    y = jnp.dot(x_ref[...], w_ref[...],
                preferred_element_type=jnp.float32) + b_ref[...]
    # Exact 2-class softmax via the sigmoid identity (no XLU reduce, no
    # approximate reciprocal): p1 = sigmoid(y1 - y0), p0 = 1 - p1.
    p1 = 1.0 / (1.0 + jnp.exp(y[:, 0:1] - y[:, 1:2]))
    p0 = 1.0 - p1
    o_ref[...] = jnp.concatenate([p0, p1, y[:, 2:]], axis=-1)


# ------------------------------ JAX wrappers ---------------------------------

def _pack_conv_w(w_oihw, cin_pad=None, cout_pad=None, dtype=jnp.bfloat16):
    """PyTorch [Cout, Cin, kh, kw] -> [kh*kw, Cin(+pad), Cout(+pad)] (zeros pad)."""
    cout, cin, kh, kw = w_oihw.shape
    w = jnp.transpose(w_oihw, (2, 3, 1, 0)).reshape(kh * kw, cin, cout)
    pad_i = (cin_pad or cin) - cin
    pad_o = (cout_pad or cout) - cout
    if pad_i or pad_o:
        w = jnp.pad(w, ((0, 0), (0, pad_i), (0, pad_o)))
    return w.astype(dtype)


def _pack_bias_alpha(bias, alpha, cout_pad=None):
    ba = jnp.stack([bias, alpha]).astype(jnp.float32)      # (2, Cout)
    pad = (cout_pad or ba.shape[1]) - ba.shape[1]
    if pad:
        ba = jnp.pad(ba, ((0, 0), (0, pad)))
    return ba


def conv1_prelu_pool(x_nhwc, w_oihw, bias, alpha):
    """conv1 + PReLU + 2x2 ceil maxpool, fused.  Output channels are padded to
    16 (extra channels are exact zeros and are nullified by conv2's padded
    weights)."""
    N, H, W, cin = x_nhwc.shape
    cin_pad = _round_up(cin, 8)                    # 3 -> 8
    cout = w_oihw.shape[0]
    cout_pad = _round_up(cout, 16)                 # 10 -> 16
    Ho, Wo = H - 2, W - 2
    Hp, Wp = (Ho + 1) // 2, (Wo + 1) // 2

    # Channel pad + column-parity split of the (smallest) input tensor; the
    # kernel builds all conv patches from these rows in VMEM.
    x = jnp.pad(x_nhwc, ((0, 0), (0, 0), (0, 0),
                         (0, cin_pad - cin))).astype(jnp.bfloat16)
    xe, xo = x[:, :, 0::2, :], x[:, :, 1::2, :]
    We, Wod = xe.shape[2], xo.shape[2]

    w = _pack_conv_w(w_oihw, cin_pad=cin_pad, cout_pad=cout_pad)
    ba = _pack_bias_alpha(bias, alpha, cout_pad=cout_pad)

    return pl.pallas_call(
        _make_conv1_pool_kernel(H, W),
        grid=(N,),
        in_specs=[
            pl.BlockSpec((1, H, We, cin_pad), lambda n: (n, 0, 0, 0)),
            pl.BlockSpec((1, H, Wod, cin_pad), lambda n: (n, 0, 0, 0)),
            pl.BlockSpec((9, cin_pad, cout_pad), lambda n: (0, 0, 0)),
            pl.BlockSpec((2, cout_pad), lambda n: (0, 0)),
        ],
        out_specs=pl.BlockSpec((1, Hp, Wp, cout_pad), lambda n: (n, 0, 0, 0)),
        out_shape=jax.ShapeDtypeStruct((N, Hp, Wp, cout_pad), jnp.bfloat16),
        compiler_params=_compiler_params(),
    )(xe, xo, w, ba)


def conv_prelu(x_nhwc, w_oihw, bias, alpha, out_dtype=jnp.bfloat16):
    """Valid conv + bias + PReLU (in-kernel patch construction, no im2col)."""
    N, H, W, cin_x = x_nhwc.shape
    cout, _, kh, kw = w_oihw.shape
    Ho, Wo = H - kh + 1, W - kw + 1
    w = _pack_conv_w(w_oihw, cin_pad=cin_x)    # zero rows for padded channels
    ba = _pack_bias_alpha(bias, alpha)
    return pl.pallas_call(
        _make_conv_prelu_kernel(kh, kw),
        grid=(N,),
        in_specs=[
            pl.BlockSpec((1, H, W, cin_x), lambda n: (n, 0, 0, 0)),
            pl.BlockSpec((kh * kw, cin_x, cout), lambda n: (0, 0, 0)),
            pl.BlockSpec((2, cout), lambda n: (0, 0)),
        ],
        out_specs=pl.BlockSpec((1, Ho, Wo, cout), lambda n: (n, 0, 0, 0)),
        out_shape=jax.ShapeDtypeStruct((N, Ho, Wo, cout), out_dtype),
        compiler_params=_compiler_params(),
    )(x_nhwc.astype(jnp.bfloat16), w, ba)


def heads_cls_reg(x2d, wa_oihw, ba_, wb_oihw, bb_):
    """Fused 1x1 heads over flattened conv3 activations (f32)."""
    M, K = x2d.shape                                     # K == 32
    wa = wa_oihw.reshape(wa_oihw.shape[0], K).T.astype(jnp.float32)   # (32, 2)
    wb = wb_oihw.reshape(wb_oihw.shape[0], K).T.astype(jnp.float32)   # (32, 4)
    w = jnp.concatenate([wa, wb], axis=1)                             # (32, 6)
    b = jnp.concatenate([ba_, bb_]).reshape(1, 6).astype(jnp.float32)
    cout = w.shape[1]
    # >=2 grid blocks so v7x's second TensorCore participates (free elsewhere).
    tm = max(8, min(_TM, _round_up(pl.cdiv(M, 2), 8)))
    out = pl.pallas_call(
        _heads_kernel,
        grid=(pl.cdiv(M, tm),),
        in_specs=[
            pl.BlockSpec((tm, K), lambda i: (i, 0)),
            pl.BlockSpec((K, cout), lambda i: (0, 0)),
            pl.BlockSpec((1, cout), lambda i: (0, 0)),
        ],
        out_specs=pl.BlockSpec((tm, cout), lambda i: (i, 0)),
        out_shape=jax.ShapeDtypeStruct((M, cout), jnp.float32),
        compiler_params=_compiler_params(),
    )(x2d.astype(jnp.float32), w, b)
    return out[:, :2], out[:, 2:]


# ------------------------------- PNet model ----------------------------------

def init_pnet_params(key):
    ks = jax.random.split(key, 10)

    def w(k, shape, scale=0.1):
        return (scale * jax.random.normal(k, shape)).astype(jnp.float32)

    return {
        "conv1_w": w(ks[0], (10, 3, 3, 3)),
        "conv1_b": w(ks[1], (10,)),
        "prelu1":  jnp.full((10,), 0.25, jnp.float32),
        "conv2_w": w(ks[2], (16, 10, 3, 3)),
        "conv2_b": w(ks[3], (16,)),
        "prelu2":  jnp.full((16,), 0.25, jnp.float32),
        "conv3_w": w(ks[4], (32, 16, 3, 3)),
        "conv3_b": w(ks[5], (32,)),
        "prelu3":  jnp.full((32,), 0.25, jnp.float32),
        "conv4_1_w": w(ks[6], (2, 32, 1, 1)),
        "conv4_1_b": w(ks[7], (2,)),
        "conv4_2_w": w(ks[8], (4, 32, 1, 1)),
        "conv4_2_b": w(ks[9], (4,)),
    }


@jax.jit
def pnet_forward(params, x_nchw):
    """x_nchw: [B, 3, H, W] float32.  Returns (b, a) in NCHW like PyTorch PNet."""
    x = jnp.transpose(x_nchw, (0, 2, 3, 1))                     # NCHW -> NHWC
    x = conv1_prelu_pool(x, params["conv1_w"], params["conv1_b"],
                         params["prelu1"])                      # fused pool
    x = conv_prelu(x, params["conv2_w"], params["conv2_b"], params["prelu2"])
    x = conv_prelu(x, params["conv3_w"], params["conv3_b"], params["prelu3"],
                   out_dtype=jnp.float32)                       # f32 for heads
    N, Ho, Wo, C = x.shape                                      # C == 32
    x2d = x.reshape(N * Ho * Wo, C)                             # 1x1 convs
    a2, b2 = heads_cls_reg(x2d, params["conv4_1_w"], params["conv4_1_b"],
                           params["conv4_2_w"], params["conv4_2_b"])
    # TODO(synk): keep NHWC for production consumers; NCHW only to match PyTorch.
    a = jnp.transpose(a2.reshape(N, Ho, Wo, 2), (0, 3, 1, 2))
    b = jnp.transpose(b2.reshape(N, Ho, Wo, 4), (0, 3, 1, 2))
    return b, a


# -------------------------- pure-JAX reference (f32) -------------------------

@jax.jit
def pnet_reference(params, x_nchw):
    def conv(x, w, b):
        y = lax.conv_general_dilated(
            x, w, window_strides=(1, 1), padding="VALID",
            dimension_numbers=("NCHW", "OIHW", "NCHW"))
        return y + b.reshape(1, -1, 1, 1)

    def prelu(x, a):
        a = a.reshape(1, -1, 1, 1)
        return jnp.where(x > 0, x, a * x)

    x = x_nchw.astype(jnp.float32)
    x = prelu(conv(x, params["conv1_w"], params["conv1_b"]), params["prelu1"])
    N, C, H, W = x.shape
    Ho, Wo = -(-H // 2), -(-W // 2)
    x = jnp.pad(x, ((0, 0), (0, 0), (0, Ho * 2 - H), (0, Wo * 2 - W)),
                constant_values=-jnp.inf)
    x = jnp.max(x.reshape(N, C, Ho, 2, Wo, 2), axis=(3, 5))
    x = prelu(conv(x, params["conv2_w"], params["conv2_b"]), params["prelu2"])
    x = prelu(conv(x, params["conv3_w"], params["conv3_b"]), params["prelu3"])
    a = jax.nn.softmax(conv(x, params["conv4_1_w"], params["conv4_1_b"]), axis=1)
    b = conv(x, params["conv4_2_w"], params["conv4_2_b"])
    return b, a


if __name__ == "__main__":
    key = jax.random.PRNGKey(0)
    pkey, xkey = jax.random.split(key)
    params = init_pnet_params(pkey)

    # Small input consistent with the module: [batch=2, channels=3, 16x16]
    x = jax.random.normal(xkey, (2, 3, 16, 16), dtype=jnp.float32)

    b, a = pnet_forward(params, x)
    jax.block_until_ready((b, a))

    # Shape / semantics sanity checks
    assert b.shape == (2, 4, 3, 3), b.shape
    assert a.shape == (2, 2, 3, 3), a.shape
    # Exact 2-class softmax: rows sum to 1 up to f32 rounding.
    assert jnp.allclose(jnp.sum(a, axis=1), 1.0, atol=1e-5)

    # Compare against the pure-JAX f32 reference (bf16 conv operands -> loose tol)
    b_ref, a_ref = pnet_reference(params, x)
    assert jnp.allclose(b, b_ref, atol=5e-2, rtol=5e-2), \
        float(jnp.max(jnp.abs(b - b_ref)))
    assert jnp.allclose(a, a_ref, atol=5e-2, rtol=5e-2), \
        float(jnp.max(jnp.abs(a - a_ref)))

    print("KERNEL_OK")
</pallas_src>

<mosaic_0001>
module attributes {stable_mosaic.version = 11 : i64} {
  func.func @kernel(%arg0: i32, %arg1: memref<1x16x8x8xbf16, #tpu.memory_space<vmem>>, %arg2: memref<1x16x8x8xbf16, #tpu.memory_space<vmem>>, %arg3: memref<9x8x16xbf16, #tpu.memory_space<vmem>>, %arg4: memref<2x16xf32, #tpu.memory_space<vmem>>, %arg5: memref<1x7x7x16xbf16, #tpu.memory_space<vmem>>) attributes {dimension_semantics = [#tpu.dimension_semantics<parallel>], iteration_bounds = array<i64: 2>, scalar_prefetch = 0 : i64, scratch_operands = 0 : i64, tpu.core_type = #tpu.core_type<tc>, window_params = [{transform_indices = @transform_0, window_bounds = array<i64: 1, 16, 8, 8>}, {transform_indices = @transform_1, window_bounds = array<i64: 1, 16, 8, 8>}, {pipeline_mode = #tpu.pipeline_mode<synchronous>, transform_indices = @transform_2, window_bounds = array<i64: 9, 8, 16>}, {pipeline_mode = #tpu.pipeline_mode<synchronous>, transform_indices = @transform_3, window_bounds = array<i64: 2, 16>}, {transform_indices = @transform_4, window_bounds = array<i64: 1, 7, 7, 16>}]} {
    %c0 = arith.constant 0 : index
    %c0_0 = arith.constant 0 : index
    %0 = vector.load %arg4[%c0, %c0_0] : memref<2x16xf32, #tpu.memory_space<vmem>>, vector<1x16xf32>
    %c1 = arith.constant 1 : index
    %c0_1 = arith.constant 0 : index
    %1 = vector.load %arg4[%c1, %c0_1] : memref<2x16xf32, #tpu.memory_space<vmem>>, vector<1x16xf32>
    %c0_i32 = arith.constant 0 : i32
    %c7_i32 = arith.constant 7 : i32
    %2 = arith.addi %c0_i32, %c7_i32 : i32
    %c1_i32 = arith.constant 1 : i32
    scf.for %arg6 = %c0_i32 to %2 step %c1_i32  : i32 {
      %c2_i32 = arith.constant 2 : i32
      %3 = arith.muli %c2_i32, %arg6 : i32
      %c1_i32_3 = arith.constant 1 : i32
      %4 = arith.addi %3, %c1_i32_3 : i32
      %c13_i32 = arith.constant 13 : i32
      %5 = arith.minsi %4, %c13_i32 : i32
      %cst = arith.constant 0.000000e+00 : f32
      %6 = vector.broadcast %cst : f32 to vector<7x16xf32>
      %cst_4 = arith.constant 0.000000e+00 : f32
      %7 = vector.broadcast %cst_4 : f32 to vector<7x16xf32>
      %c0_i32_5 = arith.constant 0 : i32
      %8 = arith.addi %3, %c0_i32_5 : i32
      %c0_6 = arith.constant 0 : index
      %9 = arith.index_cast %8 : i32 to index
      %c0_7 = arith.constant 0 : index
      %c0_8 = arith.constant 0 : index
      %10 = vector.load %arg1[%c0_6, %9, %c0_7, %c0_8] : memref<1x16x8x8xbf16, #tpu.memory_space<vmem>>, vector<1x1x8x8xbf16>
      %11 = vector.shape_cast %10 : vector<1x1x8x8xbf16> to vector<1x8x8xbf16>
      %12 = vector.shape_cast %11 : vector<1x8x8xbf16> to vector<8x8xbf16>
      %c0_i32_9 = arith.constant 0 : i32
      %13 = arith.addi %3, %c0_i32_9 : i32
      %c0_10 = arith.constant 0 : index
      %14 = arith.index_cast %13 : i32 to index
      %c0_11 = arith.constant 0 : index
      %c0_12 = arith.constant 0 : index
      %15 = vector.load %arg2[%c0_10, %14, %c0_11, %c0_12] : memref<1x16x8x8xbf16, #tpu.memory_space<vmem>>, vector<1x1x8x8xbf16>
      %16 = vector.shape_cast %15 : vector<1x1x8x8xbf16> to vector<1x8x8xbf16>
      %17 = vector.shape_cast %16 : vector<1x8x8xbf16> to vector<8x8xbf16>
      %c0_13 = arith.constant 0 : index
      %c0_14 = arith.constant 0 : index
      %c0_15 = arith.constant 0 : index
      %18 = vector.load %arg3[%c0_13, %c0_14, %c0_15] : memref<9x8x16xbf16, #tpu.memory_space<vmem>>, vector<1x8x16xbf16>
      %19 = vector.shape_cast %18 : vector<1x8x16xbf16> to vector<8x16xbf16>
      %c1_16 = arith.constant 1 : index
      %c0_17 = arith.constant 0 : index
      %c0_18 = arith.constant 0 : index
      %20 = vector.load %arg3[%c1_16, %c0_17, %c0_18] : memref<9x8x16xbf16, #tpu.memory_space<vmem>>, vector<1x8x16xbf16>
      %21 = vector.shape_cast %20 : vector<1x8x16xbf16> to vector<8x16xbf16>
      %c2 = arith.constant 2 : index
      %c0_19 = arith.constant 0 : index
      %c0_20 = arith.constant 0 : index
      %22 = vector.load %arg3[%c2, %c0_19, %c0_20] : memref<9x8x16xbf16, #tpu.memory_space<vmem>>, vector<1x8x16xbf16>
      %23 = vector.shape_cast %22 : vector<1x8x16xbf16> to vector<8x16xbf16>
      %24 = vector.extract_strided_slice %12 {offsets = [0, 0], sizes = [7, 8], strides = [1, 1]} : vector<8x8xbf16> to vector<7x8xbf16>
      %cst_21 = arith.constant dense<0.000000e+00> : vector<7x16xf32>
      %25 = tpu.matmul %24, %19, %cst_21 {dimension_numbers = #tpu.dot_dimension_numbers<[1], [0], [0], [1], [0, 0, 1, 1], [], []>} : vector<7x8xbf16>, vector<8x16xbf16>, vector<7x16xf32> -> vector<7x16xf32>
      %26 = arith.addf %6, %25 : vector<7x16xf32>
      %27 = vector.extract_strided_slice %17 {offsets = [0, 0], sizes = [7, 8], strides = [1, 1]} : vector<8x8xbf16> to vector<7x8xbf16>
      %cst_22 = arith.constant dense<0.000000e+00> : vector<7x16xf32>
      %28 = tpu.matmul %27, %21, %cst_22 {dimension_numbers = #tpu.dot_dimension_numbers<[1], [0], [0], [1], [0, 0, 1, 1], [], []>} : vector<7x8xbf16>, vector<8x16xbf16>, vector<7x16xf32> -> vector<7x16xf32>
      %29 = arith.addf %26, %28 : vector<7x16xf32>
      %30 = vector.extract_strided_slice %12 {offsets = [1, 0], sizes = [7, 8], strides = [1, 1]} : vector<8x8xbf16> to vector<7x8xbf16>
      %cst_23 = arith.constant dense<0.000000e+00> : vector<7x16xf32>
      %31 = tpu.matmul %30, %23, %cst_23 {dimension_numbers = #tpu.dot_dimension_numbers<[1], [0], [0], [1], [0, 0, 1, 1], [], []>} : vector<7x8xbf16>, vector<8x16xbf16>, vector<7x16xf32> -> vector<7x16xf32>
      %32 = arith.addf %29, %31 : vector<7x16xf32>
      %33 = vector.extract_strided_slice %17 {offsets = [0, 0], sizes = [7, 8], strides = [1, 1]} : vector<8x8xbf16> to vector<7x8xbf16>
      %cst_24 = arith.constant dense<0.000000e+00> : vector<7x16xf32>
      %34 = tpu.matmul %33, %19, %cst_24 {dimension_numbers = #tpu.dot_dimension_numbers<[1], [0], [0], [1], [0, 0, 1, 1], [], []>} : vector<7x8xbf16>, vector<8x16xbf16>, vector<7x16xf32> -> vector<7x16xf32>
      %35 = arith.addf %7, %34 : vector<7x16xf32>
      %36 = vector.extract_strided_slice %12 {offsets = [1, 0], sizes = [7, 8], strides = [1, 1]} : vector<8x8xbf16> to vector<7x8xbf16>
      %cst_25 = arith.constant dense<0.000000e+00> : vector<7x16xf32>
      %37 = tpu.matmul %36, %21, %cst_25 {dimension_numbers = #tpu.dot_dimension_numbers<[1], [0], [0], [1], [0, 0, 1, 1], [], []>} : vector<7x8xbf16>, vector<8x16xbf16>, vector<7x16xf32> -> vector<7x16xf32>
      %38 = arith.addf %35, %37 : vector<7x16xf32>
      %39 = vector.extract_strided_slice %17 {offsets = [1, 0], sizes = [7, 8], strides = [1, 1]} : vector<8x8xbf16> to vector<7x8xbf16>
      %cst_26 = arith.constant dense<0.000000e+00> : vector<7x16xf32>
      %40 = tpu.matmul %39, %23, %cst_26 {dimension_numbers = #tpu.dot_dimension_numbers<[1], [0], [0], [1], [0, 0, 1, 1], [], []>} : vector<7x8xbf16>, vector<8x16xbf16>, vector<7x16xf32> -> vector<7x16xf32>
      %41 = arith.addf %38, %40 : vector<7x16xf32>
      %c1_i32_27 = arith.constant 1 : i32
      %42 = arith.addi %3, %c1_i32_27 : i32
      %c0_28 = arith.constant 0 : index
      %43 = arith.index_cast %42 : i32 to index
      %c0_29 = arith.constant 0 : index
      %c0_30 = arith.constant 0 : index
      %44 = vector.load %arg1[%c0_28, %43, %c0_29, %c0_30] : memref<1x16x8x8xbf16, #tpu.memory_space<vmem>>, vector<1x1x8x8xbf16>
      %45 = vector.shape_cast %44 : vector<1x1x8x8xbf16> to vector<1x8x8xbf16>
      %46 = vector.shape_cast %45 : vector<1x8x8xbf16> to vector<8x8xbf16>
      %c1_i32_31 = arith.constant 1 : i32
      %47 = arith.addi %3, %c1_i32_31 : i32
      %c0_32 = arith.constant 0 : index
      %48 = arith.index_cast %47 : i32 to index
      %c0_33 = arith.constant 0 : index
      %c0_34 = arith.constant 0 : index
      %49 = vector.load %arg2[%c0_32, %48, %c0_33, %c0_34] : memref<1x16x8x8xbf16, #tpu.memory_space<vmem>>, vector<1x1x8x8xbf16>
      %50 = vector.shape_cast %49 : vector<1x1x8x8xbf16> to vector<1x8x8xbf16>
      %51 = vector.shape_cast %50 : vector<1x8x8xbf16> to vector<8x8xbf16>
      %c3 = arith.constant 3 : index
      %c0_35 = arith.constant 0 : index
      %c0_36 = arith.constant 0 : index
      %52 = vector.load %arg3[%c3, %c0_35, %c0_36] : memref<9x8x16xbf16, #tpu.memory_space<vmem>>, vector<1x8x16xbf16>
      %53 = vector.shape_cast %52 : vector<1x8x16xbf16> to vector<8x16xbf16>
      %c4 = arith.constant 4 : index
      %c0_37 = arith.constant 0 : index
      %c0_38 = arith.constant 0 : index
      %54 = vector.load %arg3[%c4, %c0_37, %c0_38] : memref<9x8x16xbf16, #tpu.memory_space<vmem>>, vector<1x8x16xbf16>
      %55 = vector.shape_cast %54 : vector<1x8x16xbf16> to vector<8x16xbf16>
      %c5 = arith.constant 5 : index
      %c0_39 = arith.constant 0 : index
      %c0_40 = arith.constant 0 : index
      %56 = vector.load %arg3[%c5, %c0_39, %c0_40] : memref<9x8x16xbf16, #tpu.memory_space<vmem>>, vector<1x8x16xbf16>
      %57 = vector.shape_cast %56 : vector<1x8x16xbf16> to vector<8x16xbf16>
      %58 = vector.extract_strided_slice %46 {offsets = [0, 0], sizes = [7, 8], strides = [1, 1]} : vector<8x8xbf16> to vector<7x8xbf16>
      %cst_41 = arith.constant dense<0.000000e+00> : vector<7x16xf32>
      %59 = tpu.matmul %58, %53, %cst_41 {dimension_numbers = #tpu.dot_dimension_numbers<[1], [0], [0], [1], [0, 0, 1, 1], [], []>} : vector<7x8xbf16>, vector<8x16xbf16>, vector<7x16xf32> -> vector<7x16xf32>
      %60 = arith.addf %32, %59 : vector<7x16xf32>
      %61 = vector.extract_strided_slice %51 {offsets = [0, 0], sizes = [7, 8], strides = [1, 1]} : vector<8x8xbf16> to vector<7x8xbf16>
      %cst_42 = arith.constant dense<0.000000e+00> : vector<7x16xf32>
      %62 = tpu.matmul %61, %55, %cst_42 {dimension_numbers = #tpu.dot_dimension_numbers<[1], [0], [0], [1], [0, 0, 1, 1], [], []>} : vector<7x8xbf16>, vector<8x16xbf16>, vector<7x16xf32> -> vector<7x16xf32>
      %63 = arith.addf %60, %62 : vector<7x16xf32>
      %64 = vector.extract_strided_slice %46 {offsets = [1, 0], sizes = [7, 8], strides = [1, 1]} : vector<8x8xbf16> to vector<7x8xbf16>
      %cst_43 = arith.constant dense<0.000000e+00> : vector<7x16xf32>
      %65 = tpu.matmul %64, %57, %cst_43 {dimension_numbers = #tpu.dot_dimension_numbers<[1], [0], [0], [1], [0, 0, 1, 1], [], []>} : vector<7x8xbf16>, vector<8x16xbf16>, vector<7x16xf32> -> vector<7x16xf32>
      %66 = arith.addf %63, %65 : vector<7x16xf32>
      %67 = vector.extract_strided_slice %51 {offsets = [0, 0], sizes = [7, 8], strides = [1, 1]} : vector<8x8xbf16> to vector<7x8xbf16>
      %cst_44 = arith.constant dense<0.000000e+00> : vector<7x16xf32>
      %68 = tpu.matmul %67, %53, %cst_44 {dimension_numbers = #tpu.dot_dimension_numbers<[1], [0], [0], [1], [0, 0, 1, 1], [], []>} : vector<7x8xbf16>, vector<8x16xbf16>, vector<7x16xf32> -> vector<7x16xf32>
      %69 = arith.addf %41, %68 : vector<7x16xf32>
      %70 = vector.extract_strided_slice %46 {offsets = [1, 0], sizes = [7, 8], strides = [1, 1]} : vector<8x8xbf16> to vector<7x8xbf16>
      %cst_45 = arith.constant dense<0.000000e+00> : vector<7x16xf32>
      %71 = tpu.matmul %70, %55, %cst_45 {dimension_numbers = #tpu.dot_dimension_numbers<[1], [0], [0], [1], [0, 0, 1, 1], [], []>} : vector<7x8xbf16>, vector<8x16xbf16>, vector<7x16xf32> -> vector<7x16xf32>
      %72 = arith.addf %69, %71 : vector<7x16xf32>
      %73 = vector.extract_strided_slice %51 {offsets = [1, 0], sizes = [7, 8], strides = [1, 1]} : vector<8x8xbf16> to vector<7x8xbf16>
      %cst_46 = arith.constant dense<0.000000e+00> : vector<7x16xf32>
      %74 = tpu.matmul %73, %57, %cst_46 {dimension_numbers = #tpu.dot_dimension_numbers<[1], [0], [0], [1], [0, 0, 1, 1], [], []>} : vector<7x8xbf16>, vector<8x16xbf16>, vector<7x16xf32> -> vector<7x16xf32>
      %75 = arith.addf %72, %74 : vector<7x16xf32>
      %c2_i32_47 = arith.constant 2 : i32
      %76 = arith.addi %3, %c2_i32_47 : i32
      %c0_48 = arith.constant 0 : index
      %77 = arith.index_cast %76 : i32 to index
      %c0_49 = arith.constant 0 : index
      %c0_50 = arith.constant 0 : index
      %78 = vector.load %arg1[%c0_48, %77, %c0_49, %c0_50] : memref<1x16x8x8xbf16, #tpu.memory_space<vmem>>, vector<1x1x8x8xbf16>
      %79 = vector.shape_cast %78 : vector<1x1x8x8xbf16> to vector<1x8x8xbf16>
      %80 = vector.shape_cast %79 : vector<1x8x8xbf16> to vector<8x8xbf16>
      %c2_i32_51 = arith.constant 2 : i32
      %81 = arith.addi %3, %c2_i32_51 : i32
      %c0_52 = arith.constant 0 : index
      %82 = arith.index_cast %81 : i32 to index
      %c0_53 = arith.constant 0 : index
      %c0_54 = arith.constant 0 : index
      %83 = vector.load %arg2[%c0_52, %82, %c0_53, %c0_54] : memref<1x16x8x8xbf16, #tpu.memory_space<vmem>>, vector<1x1x8x8xbf16>
      %84 = vector.shape_cast %83 : vector<1x1x8x8xbf16> to vector<1x8x8xbf16>
      %85 = vector.shape_cast %84 : vector<1x8x8xbf16> to vector<8x8xbf16>
      %c6 = arith.constant 6 : index
      %c0_55 = arith.constant 0 : index
      %c0_56 = arith.constant 0 : index
      %86 = vector.load %arg3[%c6, %c0_55, %c0_56] : memref<9x8x16xbf16, #tpu.memory_space<vmem>>, vector<1x8x16xbf16>
      %87 = vector.shape_cast %86 : vector<1x8x16xbf16> to vector<8x16xbf16>
      %c7 = arith.constant 7 : index
      %c0_57 = arith.constant 0 : index
      %c0_58 = arith.constant 0 : index
      %88 = vector.load %arg3[%c7, %c0_57, %c0_58] : memref<9x8x16xbf16, #tpu.memory_space<vmem>>, vector<1x8x16xbf16>
      %89 = vector.shape_cast %88 : vector<1x8x16xbf16> to vector<8x16xbf16>
      %c8 = arith.constant 8 : index
      %c0_59 = arith.constant 0 : index
      %c0_60 = arith.constant 0 : index
      %90 = vector.load %arg3[%c8, %c0_59, %c0_60] : memref<9x8x16xbf16, #tpu.memory_space<vmem>>, vector<1x8x16xbf16>
      %91 = vector.shape_cast %90 : vector<1x8x16xbf16> to vector<8x16xbf16>
      %92 = vector.extract_strided_slice %80 {offsets = [0, 0], sizes = [7, 8], strides = [1, 1]} : vector<8x8xbf16> to vector<7x8xbf16>
      %cst_61 = arith.constant dense<0.000000e+00> : vector<7x16xf32>
      %93 = tpu.matmul %92, %87, %cst_61 {dimension_numbers = #tpu.dot_dimension_numbers<[1], [0], [0], [1], [0, 0, 1, 1], [], []>} : vector<7x8xbf16>, vector<8x16xbf16>, vector<7x16xf32> -> vector<7x16xf32>
      %94 = arith.addf %66, %93 : vector<7x16xf32>
      %95 = vector.extract_strided_slice %85 {offsets = [0, 0], sizes = [7, 8], strides = [1, 1]} : vector<8x8xbf16> to vector<7x8xbf16>
      %cst_62 = arith.constant dense<0.000000e+00> : vector<7x16xf32>
      %96 = tpu.matmul %95, %89, %cst_62 {dimension_numbers = #tpu.dot_dimension_numbers<[1], [0], [0], [1], [0, 0, 1, 1], [], []>} : vector<7x8xbf16>, vector<8x16xbf16>, vector<7x16xf32> -> vector<7x16xf32>
      %97 = arith.addf %94, %96 : vector<7x16xf32>
      %98 = vector.extract_strided_slice %80 {offsets = [1, 0], sizes = [7, 8], strides = [1, 1]} : vector<8x8xbf16> to vector<7x8xbf16>
      %cst_63 = arith.constant dense<0.000000e+00> : vector<7x16xf32>
      %99 = tpu.matmul %98, %91, %cst_63 {dimension_numbers = #tpu.dot_dimension_numbers<[1], [0], [0], [1], [0, 0, 1, 1], [], []>} : vector<7x8xbf16>, vector<8x16xbf16>, vector<7x16xf32> -> vector<7x16xf32>
      %100 = arith.addf %97, %99 : vector<7x16xf32>
      %101 = vector.extract_strided_slice %85 {offsets = [0, 0], sizes = [7, 8], strides = [1, 1]} : vector<8x8xbf16> to vector<7x8xbf16>
      %cst_64 = arith.constant dense<0.000000e+00> : vector<7x16xf32>
      %102 = tpu.matmul %101, %87, %cst_64 {dimension_numbers = #tpu.dot_dimension_numbers<[1], [0], [0], [1], [0, 0, 1, 1], [], []>} : vector<7x8xbf16>, vector<8x16xbf16>, vector<7x16xf32> -> vector<7x16xf32>
      %103 = arith.addf %75, %102 : vector<7x16xf32>
      %104 = vector.extract_strided_slice %80 {offsets = [1, 0], sizes = [7, 8], strides = [1, 1]} : vector<8x8xbf16> to vector<7x8xbf16>
      %cst_65 = arith.constant dense<0.000000e+00> : vector<7x16xf32>
      %105 = tpu.matmul %104, %89, %cst_65 {dimension_numbers = #tpu.dot_dimension_numbers<[1], [0], [0], [1], [0, 0, 1, 1], [], []>} : vector<7x8xbf16>, vector<8x16xbf16>, vector<7x16xf32> -> vector<7x16xf32>
      %106 = arith.addf %103, %105 : vector<7x16xf32>
      %107 = vector.extract_strided_slice %85 {offsets = [1, 0], sizes = [7, 8], strides = [1, 1]} : vector<8x8xbf16> to vector<7x8xbf16>
      %cst_66 = arith.constant dense<0.000000e+00> : vector<7x16xf32>
      %108 = tpu.matmul %107, %91, %cst_66 {dimension_numbers = #tpu.dot_dimension_numbers<[1], [0], [0], [1], [0, 0, 1, 1], [], []>} : vector<7x8xbf16>, vector<8x16xbf16>, vector<7x16xf32> -> vector<7x16xf32>
      %109 = arith.addf %106, %108 : vector<7x16xf32>
      %110 = vector.broadcast %0 : vector<1x16xf32> to vector<7x16xf32>
      %111 = arith.addf %100, %110 : vector<7x16xf32>
      %cst_67 = arith.constant 0.000000e+00 : f32
      %112 = vector.broadcast %cst_67 : f32 to vector<7x16xf32>
      %113 = arith.cmpf ogt, %111, %112 : vector<7x16xf32>
      %114 = vector.broadcast %1 : vector<1x16xf32> to vector<7x16xf32>
      %115 = arith.mulf %114, %111 : vector<7x16xf32>
      %116 = arith.select %113, %111, %115 : vector<7x16xi1>, vector<7x16xf32>
      %117 = vector.broadcast %0 : vector<1x16xf32> to vector<7x16xf32>
      %118 = arith.addf %109, %117 : vector<7x16xf32>
      %cst_68 = arith.constant 0.000000e+00 : f32
      %119 = vector.broadcast %cst_68 : f32 to vector<7x16xf32>
      %120 = arith.cmpf ogt, %118, %119 : vector<7x16xf32>
      %121 = vector.broadcast %1 : vector<1x16xf32> to vector<7x16xf32>
      %122 = arith.mulf %121, %118 : vector<7x16xf32>
      %123 = arith.select %120, %118, %122 : vector<7x16xi1>, vector<7x16xf32>
      %cst_69 = arith.constant 0.000000e+00 : f32
      %124 = vector.broadcast %cst_69 : f32 to vector<7x16xf32>
      %cst_70 = arith.constant 0.000000e+00 : f32
      %125 = vector.broadcast %cst_70 : f32 to vector<7x16xf32>
      %c0_i32_71 = arith.constant 0 : i32
      %126 = arith.addi %5, %c0_i32_71 : i32
      %c0_72 = arith.constant 0 : index
      %127 = arith.index_cast %126 : i32 to index
      %c0_73 = arith.constant 0 : index
      %c0_74 = arith.constant 0 : index
      %128 = vector.load %arg1[%c0_72, %127, %c0_73, %c0_74] : memref<1x16x8x8xbf16, #tpu.memory_space<vmem>>, vector<1x1x8x8xbf16>
      %129 = vector.shape_cast %128 : vector<1x1x8x8xbf16> to vector<1x8x8xbf16>
      %130 = vector.shape_cast %129 : vector<1x8x8xbf16> to vector<8x8xbf16>
      %c0_i32_75 = arith.constant 0 : i32
      %131 = arith.addi %5, %c0_i32_75 : i32
      %c0_76 = arith.constant 0 : index
      %132 = arith.index_cast %131 : i32 to index
      %c0_77 = arith.constant 0 : index
      %c0_78 = arith.constant 0 : index
      %133 = vector.load %arg2[%c0_76, %132, %c0_77, %c0_78] : memref<1x16x8x8xbf16, #tpu.memory_space<vmem>>, vector<1x1x8x8xbf16>
      %134 = vector.shape_cast %133 : vector<1x1x8x8xbf16> to vector<1x8x8xbf16>
      %135 = vector.shape_cast %134 : vector<1x8x8xbf16> to vector<8x8xbf16>
      %c0_79 = arith.constant 0 : index
      %c0_80 = arith.constant 0 : index
      %c0_81 = arith.constant 0 : index
      %136 = vector.load %arg3[%c0_79, %c0_80, %c0_81] : memref<9x8x16xbf16, #tpu.memory_space<vmem>>, vector<1x8x16xbf16>
      %137 = vector.shape_cast %136 : vector<1x8x16xbf16> to vector<8x16xbf16>
      %c1_82 = arith.constant 1 : index
      %c0_83 = arith.constant 0 : index
      %c0_84 = arith.constant 0 : index
      %138 = vector.load %arg3[%c1_82, %c0_83, %c0_84] : memref<9x8x16xbf16, #tpu.memory_space<vmem>>, vector<1x8x16xbf16>
      %139 = vector.shape_cast %138 : vector<1x8x16xbf16> to vector<8x16xbf16>
      %c2_85 = arith.constant 2 : index
      %c0_86 = arith.constant 0 : index
      %c0_87 = arith.constant 0 : index
      %140 = vector.load %arg3[%c2_85, %c0_86, %c0_87] : memref<9x8x16xbf16, #tpu.memory_space<vmem>>, vector<1x8x16xbf16>
      %141 = vector.shape_cast %140 : vector<1x8x16xbf16> to vector<8x16xbf16>
      %142 = vector.extract_strided_slice %130 {offsets = [0, 0], sizes = [7, 8], strides = [1, 1]} : vector<8x8xbf16> to vector<7x8xbf16>
      %cst_88 = arith.constant dense<0.000000e+00> : vector<7x16xf32>
      %143 = tpu.matmul %142, %137, %cst_88 {dimension_numbers = #tpu.dot_dimension_numbers<[1], [0], [0], [1], [0, 0, 1, 1], [], []>} : vector<7x8xbf16>, vector<8x16xbf16>, vector<7x16xf32> -> vector<7x16xf32>
      %144 = arith.addf %124, %143 : vector<7x16xf32>
      %145 = vector.extract_strided_slice %135 {offsets = [0, 0], sizes = [7, 8], strides = [1, 1]} : vector<8x8xbf16> to vector<7x8xbf16>
      %cst_89 = arith.constant dense<0.000000e+00> : vector<7x16xf32>
      %146 = tpu.matmul %145, %139, %cst_89 {dimension_numbers = #tpu.dot_dimension_numbers<[1], [0], [0], [1], [0, 0, 1, 1], [], []>} : vector<7x8xbf16>, vector<8x16xbf16>, vector<7x16xf32> -> vector<7x16xf32>
      %147 = arith.addf %144, %146 : vector<7x16xf32>
      %148 = vector.extract_strided_slice %130 {offsets = [1, 0], sizes = [7, 8], strides = [1, 1]} : vector<8x8xbf16> to vector<7x8xbf16>
      %cst_90 = arith.constant dense<0.000000e+00> : vector<7x16xf32>
      %149 = tpu.matmul %148, %141, %cst_90 {dimension_numbers = #tpu.dot_dimension_numbers<[1], [0], [0], [1], [0, 0, 1, 1], [], []>} : vector<7x8xbf16>, vector<8x16xbf16>, vector<7x16xf32> -> vector<7x16xf32>
      %150 = arith.addf %147, %149 : vector<7x16xf32>
      %151 = vector.extract_strided_slice %135 {offsets = [0, 0], sizes = [7, 8], strides = [1, 1]} : vector<8x8xbf16> to vector<7x8xbf16>
      %cst_91 = arith.constant dense<0.000000e+00> : vector<7x16xf32>
      %152 = tpu.matmul %151, %137, %cst_91 {dimension_numbers = #tpu.dot_dimension_numbers<[1], [0], [0], [1], [0, 0, 1, 1], [], []>} : vector<7x8xbf16>, vector<8x16xbf16>, vector<7x16xf32> -> vector<7x16xf32>
      %153 = arith.addf %125, %152 : vector<7x16xf32>
      %154 = vector.extract_strided_slice %130 {offsets = [1, 0], sizes = [7, 8], strides = [1, 1]} : vector<8x8xbf16> to vector<7x8xbf16>
      %cst_92 = arith.constant dense<0.000000e+00> : vector<7x16xf32>
      %155 = tpu.matmul %154, %139, %cst_92 {dimension_numbers = #tpu.dot_dimension_numbers<[1], [0], [0], [1], [0, 0, 1, 1], [], []>} : vector<7x8xbf16>, vector<8x16xbf16>, vector<7x16xf32> -> vector<7x16xf32>
      %156 = arith.addf %153, %155 : vector<7x16xf32>
      %157 = vector.extract_strided_slice %135 {offsets = [1, 0], sizes = [7, 8], strides = [1, 1]} : vector<8x8xbf16> to vector<7x8xbf16>
      %cst_93 = arith.constant dense<0.000000e+00> : vector<7x16xf32>
      %158 = tpu.matmul %157, %141, %cst_93 {dimension_numbers = #tpu.dot_dimension_numbers<[1], [0], [0], [1], [0, 0, 1, 1], [], []>} : vector<7x8xbf16>, vector<8x16xbf16>, vector<7x16xf32> -> vector<7x16xf32>
      %159 = arith.addf %156, %158 : vector<7x16xf32>
      %c1_i32_94 = arith.constant 1 : i32
      %160 = arith.addi %5, %c1_i32_94 : i32
      %c0_95 = arith.constant 0 : index
      %161 = arith.index_cast %160 : i32 to index
      %c0_96 = arith.constant 0 : index
      %c0_97 = arith.constant 0 : index
      %162 = vector.load %arg1[%c0_95, %161, %c0_96, %c0_97] : memref<1x16x8x8xbf16, #tpu.memory_space<vmem>>, vector<1x1x8x8xbf16>
      %163 = vector.shape_cast %162 : vector<1x1x8x8xbf16> to vector<1x8x8xbf16>
      %164 = vector.shape_cast %163 : vector<1x8x8xbf16> to vector<8x8xbf16>
      %c1_i32_98 = arith.constant 1 : i32
      %165 = arith.addi %5, %c1_i32_98 : i32
      %c0_99 = arith.constant 0 : index
      %166 = arith.index_cast %165 : i32 to index
      %c0_100 = arith.constant 0 : index
      %c0_101 = arith.constant 0 : index
      %167 = vector.load %arg2[%c0_99, %166, %c0_100, %c0_101] : memref<1x16x8x8xbf16, #tpu.memory_space<vmem>>, vector<1x1x8x8xbf16>
      %168 = vector.shape_cast %167 : vector<1x1x8x8xbf16> to vector<1x8x8xbf16>
      %169 = vector.shape_cast %168 : vector<1x8x8xbf16> to vector<8x8xbf16>
      %c3_102 = arith.constant 3 : index
      %c0_103 = arith.constant 0 : index
      %c0_104 = arith.constant 0 : index
      %170 = vector.load %arg3[%c3_102, %c0_103, %c0_104] : memref<9x8x16xbf16, #tpu.memory_space<vmem>>, vector<1x8x16xbf16>
      %171 = vector.shape_cast %170 : vector<1x8x16xbf16> to vector<8x16xbf16>
      %c4_105 = arith.constant 4 : index
      %c0_106 = arith.constant 0 : index
      %c0_107 = arith.constant 0 : index
      %172 = vector.load %arg3[%c4_105, %c0_106, %c0_107] : memref<9x8x16xbf16, #tpu.memory_space<vmem>>, vector<1x8x16xbf16>
      %173 = vector.shape_cast %172 : vector<1x8x16xbf16> to vector<8x16xbf16>
      %c5_108 = arith.constant 5 : index
      %c0_109 = arith.constant 0 : index
      %c0_110 = arith.constant 0 : index
      %174 = vector.load %arg3[%c5_108, %c0_109, %c0_110] : memref<9x8x16xbf16, #tpu.memory_space<vmem>>, vector<1x8x16xbf16>
      %175 = vector.shape_cast %174 : vector<1x8x16xbf16> to vector<8x16xbf16>
      %176 = vector.extract_strided_slice %164 {offsets = [0, 0], sizes = [7, 8], strides = [1, 1]} : vector<8x8xbf16> to vector<7x8xbf16>
      %cst_111 = arith.constant dense<0.000000e+00> : vector<7x16xf32>
      %177 = tpu.matmul %176, %171, %cst_111 {dimension_numbers = #tpu.dot_dimension_numbers<[1], [0], [0], [1], [0, 0, 1, 1], [], []>} : vector<7x8xbf16>, vector<8x16xbf16>, vector<7x16xf32> -> vector<7x16xf32>
      %178 = arith.addf %150, %177 : vector<7x16xf32>
      %179 = vector.extract_strided_slice %169 {offsets = [0, 0], sizes = [7, 8], strides = [1, 1]} : vector<8x8xbf16> to vector<7x8xbf16>
      %cst_112 = arith.constant dense<0.000000e+00> : vector<7x16xf32>
      %180 = tpu.matmul %179, %173, %cst_112 {dimension_numbers = #tpu.dot_dimension_numbers<[1], [0], [0], [1], [0, 0, 1, 1], [], []>} : vector<7x8xbf16>, vector<8x16xbf16>, vector<7x16xf32> -> vector<7x16xf32>
      %181 = arith.addf %178, %180 : vector<7x16xf32>
      %182 = vector.extract_strided_slice %164 {offsets = [1, 0], sizes = [7, 8], strides = [1, 1]} : vector<8x8xbf16> to vector<7x8xbf16>
      %cst_113 = arith.constant dense<0.000000e+00> : vector<7x16xf32>
      %183 = tpu.matmul %182, %175, %cst_113 {dimension_numbers = #tpu.dot_dimension_numbers<[1], [0], [0], [1], [0, 0, 1, 1], [], []>} : vector<7x8xbf16>, vector<8x16xbf16>, vector<7x16xf32> -> vector<7x16xf32>
      %184 = arith.addf %181, %183 : vector<7x16xf32>
      %185 = vector.extract_strided_slice %169 {offsets = [0, 0], sizes = [7, 8], strides = [1, 1]} : vector<8x8xbf16> to vector<7x8xbf16>
      %cst_114 = arith.constant dense<0.000000e+00> : vector<7x16xf32>
      %186 = tpu.matmul %185, %171, %cst_114 {dimension_numbers = #tpu.dot_dimension_numbers<[1], [0], [0], [1], [0, 0, 1, 1], [], []>} : vector<7x8xbf16>, vector<8x16xbf16>, vector<7x16xf32> -> vector<7x16xf32>
      %187 = arith.addf %159, %186 : vector<7x16xf32>
      %188 = vector.extract_strided_slice %164 {offsets = [1, 0], sizes = [7, 8], strides = [1, 1]} : vector<8x8xbf16> to vector<7x8xbf16>
      %cst_115 = arith.constant dense<0.000000e+00> : vector<7x16xf32>
      %189 = tpu.matmul %188, %173, %cst_115 {dimension_numbers = #tpu.dot_dimension_numbers<[1], [0], [0], [1], [0, 0, 1, 1], [], []>} : vector<7x8xbf16>, vector<8x16xbf16>, vector<7x16xf32> -> vector<7x16xf32>
      %190 = arith.addf %187, %189 : vector<7x16xf32>
      %191 = vector.extract_strided_slice %169 {offsets = [1, 0], sizes = [7, 8], strides = [1, 1]} : vector<8x8xbf16> to vector<7x8xbf16>
      %cst_116 = arith.constant dense<0.000000e+00> : vector<7x16xf32>
      %192 = tpu.matmul %191, %175, %cst_116 {dimension_numbers = #tpu.dot_dimension_numbers<[1], [0], [0], [1], [0, 0, 1, 1], [], []>} : vector<7x8xbf16>, vector<8x16xbf16>, vector<7x16xf32> -> vector<7x16xf32>
      %193 = arith.addf %190, %192 : vector<7x16xf32>
      %c2_i32_117 = arith.constant 2 : i32
      %194 = arith.addi %5, %c2_i32_117 : i32
      %c0_118 = arith.constant 0 : index
      %195 = arith.index_cast %194 : i32 to index
      %c0_119 = arith.constant 0 : index
      %c0_120 = arith.constant 0 : index
      %196 = vector.load %arg1[%c0_118, %195, %c0_119, %c0_120] : memref<1x16x8x8xbf16, #tpu.memory_space<vmem>>, vector<1x1x8x8xbf16>
      %197 = vector.shape_cast %196 : vector<1x1x8x8xbf16> to vector<1x8x8xbf16>
      %198 = vector.shape_cast %197 : vector<1x8x8xbf16> to vector<8x8xbf16>
      %c2_i32_121 = arith.constant 2 : i32
      %199 = arith.addi %5, %c2_i32_121 : i32
      %c0_122 = arith.constant 0 : index
      %200 = arith.index_cast %199 : i32 to index
      %c0_123 = arith.constant 0 : index
      %c0_124 = arith.constant 0 : index
      %201 = vector.load %arg2[%c0_122, %200, %c0_123, %c0_124] : memref<1x16x8x8xbf16, #tpu.memory_space<vmem>>, vector<1x1x8x8xbf16>
      %202 = vector.shape_cast %201 : vector<1x1x8x8xbf16> to vector<1x8x8xbf16>
      %203 = vector.shape_cast %202 : vector<1x8x8xbf16> to vector<8x8xbf16>
      %c6_125 = arith.constant 6 : index
      %c0_126 = arith.constant 0 : index
      %c0_127 = arith.constant 0 : index
      %204 = vector.load %arg3[%c6_125, %c0_126, %c0_127] : memref<9x8x16xbf16, #tpu.memory_space<vmem>>, vector<1x8x16xbf16>
      %205 = vector.shape_cast %204 : vector<1x8x16xbf16> to vector<8x16xbf16>
      %c7_128 = arith.constant 7 : index
      %c0_129 = arith.constant 0 : index
      %c0_130 = arith.constant 0 : index
      %206 = vector.load %arg3[%c7_128, %c0_129, %c0_130] : memref<9x8x16xbf16, #tpu.memory_space<vmem>>, vector<1x8x16xbf16>
      %207 = vector.shape_cast %206 : vector<1x8x16xbf16> to vector<8x16xbf16>
      %c8_131 = arith.constant 8 : index
      %c0_132 = arith.constant 0 : index
      %c0_133 = arith.constant 0 : index
      %208 = vector.load %arg3[%c8_131, %c0_132, %c0_133] : memref<9x8x16xbf16, #tpu.memory_space<vmem>>, vector<1x8x16xbf16>
      %209 = vector.shape_cast %208 : vector<1x8x16xbf16> to vector<8x16xbf16>
      %210 = vector.extract_strided_slice %198 {offsets = [0, 0], sizes = [7, 8], strides = [1, 1]} : vector<8x8xbf16> to vector<7x8xbf16>
      %cst_134 = arith.constant dense<0.000000e+00> : vector<7x16xf32>
      %211 = tpu.matmul %210, %205, %cst_134 {dimension_numbers = #tpu.dot_dimension_numbers<[1], [0], [0], [1], [0, 0, 1, 1], [], []>} : vector<7x8xbf16>, vector<8x16xbf16>, vector<7x16xf32> -> vector<7x16xf32>
      %212 = arith.addf %184, %211 : vector<7x16xf32>
      %213 = vector.extract_strided_slice %203 {offsets = [0, 0], sizes = [7, 8], strides = [1, 1]} : vector<8x8xbf16> to vector<7x8xbf16>
      %cst_135 = arith.constant dense<0.000000e+00> : vector<7x16xf32>
      %214 = tpu.matmul %213, %207, %cst_135 {dimension_numbers = #tpu.dot_dimension_numbers<[1], [0], [0], [1], [0, 0, 1, 1], [], []>} : vector<7x8xbf16>, vector<8x16xbf16>, vector<7x16xf32> -> vector<7x16xf32>
      %215 = arith.addf %212, %214 : vector<7x16xf32>
      %216 = vector.extract_strided_slice %198 {offsets = [1, 0], sizes = [7, 8], strides = [1, 1]} : vector<8x8xbf16> to vector<7x8xbf16>
      %cst_136 = arith.constant dense<0.000000e+00> : vector<7x16xf32>
      %217 = tpu.matmul %216, %209, %cst_136 {dimension_numbers = #tpu.dot_dimension_numbers<[1], [0], [0], [1], [0, 0, 1, 1], [], []>} : vector<7x8xbf16>, vector<8x16xbf16>, vector<7x16xf32> -> vector<7x16xf32>
      %218 = arith.addf %215, %217 : vector<7x16xf32>
      %219 = vector.extract_strided_slice %203 {offsets = [0, 0], sizes = [7, 8], strides = [1, 1]} : vector<8x8xbf16> to vector<7x8xbf16>
      %cst_137 = arith.constant dense<0.000000e+00> : vector<7x16xf32>
      %220 = tpu.matmul %219, %205, %cst_137 {dimension_numbers = #tpu.dot_dimension_numbers<[1], [0], [0], [1], [0, 0, 1, 1], [], []>} : vector<7x8xbf16>, vector<8x16xbf16>, vector<7x16xf32> -> vector<7x16xf32>
      %221 = arith.addf %193, %220 : vector<7x16xf32>
      %222 = vector.extract_strided_slice %198 {offsets = [1, 0], sizes = [7, 8], strides = [1, 1]} : vector<8x8xbf16> to vector<7x8xbf16>
      %cst_138 = arith.constant dense<0.000000e+00> : vector<7x16xf32>
      %223 = tpu.matmul %222, %207, %cst_138 {dimension_numbers = #tpu.dot_dimension_numbers<[1], [0], [0], [1], [0, 0, 1, 1], [], []>} : vector<7x8xbf16>, vector<8x16xbf16>, vector<7x16xf32> -> vector<7x16xf32>
      %224 = arith.addf %221, %223 : vector<7x16xf32>
      %225 = vector.extract_strided_slice %203 {offsets = [1, 0], sizes = [7, 8], strides = [1, 1]} : vector<8x8xbf16> to vector<7x8xbf16>
      %cst_139 = arith.constant dense<0.000000e+00> : vector<7x16xf32>
      %226 = tpu.matmul %225, %209, %cst_139 {dimension_numbers = #tpu.dot_dimension_numbers<[1], [0], [0], [1], [0, 0, 1, 1], [], []>} : vector<7x8xbf16>, vector<8x16xbf16>, vector<7x16xf32> -> vector<7x16xf32>
      %227 = arith.addf %224, %226 : vector<7x16xf32>
      %228 = vector.broadcast %0 : vector<1x16xf32> to vector<7x16xf32>
      %229 = arith.addf %218, %228 : vector<7x16xf32>
      %cst_140 = arith.constant 0.000000e+00 : f32
      %230 = vector.broadcast %cst_140 : f32 to vector<7x16xf32>
      %231 = arith.cmpf ogt, %229, %230 : vector<7x16xf32>
      %232 = vector.broadcast %1 : vector<1x16xf32> to vector<7x16xf32>
      %233 = arith.mulf %232, %229 : vector<7x16xf32>
      %234 = arith.select %231, %229, %233 : vector<7x16xi1>, vector<7x16xf32>
      %235 = vector.broadcast %0 : vector<1x16xf32> to vector<7x16xf32>
      %236 = arith.addf %227, %235 : vector<7x16xf32>
      %cst_141 = arith.constant 0.000000e+00 : f32
      %237 = vector.broadcast %cst_141 : f32 to vector<7x16xf32>
      %238 = arith.cmpf ogt, %236, %237 : vector<7x16xf32>
      %239 = vector.broadcast %1 : vector<1x16xf32> to vector<7x16xf32>
      %240 = arith.mulf %239, %236 : vector<7x16xf32>
      %241 = arith.select %238, %236, %240 : vector<7x16xi1>, vector<7x16xf32>
      %242 = arith.maximumf %116, %234 : vector<7x16xf32>
      %243 = arith.maximumf %123, %241 : vector<7x16xf32>
      %244 = arith.maximumf %242, %243 : vector<7x16xf32>
      %245 = vector.shape_cast %244 : vector<7x16xf32> to vector<1x7x16xf32>
      %246 = arith.truncf %245 : vector<1x7x16xf32> to vector<1x7x16xbf16>
      %c0_142 = arith.constant 0 : index
      %247 = arith.index_cast %arg6 : i32 to index
      %c0_143 = arith.constant 0 : index
      %c0_144 = arith.constant 0 : index
      %248 = vector.load %arg5[%c0_142, %247, %c0_143, %c0_144] : memref<1x7x7x16xbf16, #tpu.memory_space<vmem>>, vector<1x1x7x16xbf16>
      %249 = vector.shape_cast %248 : vector<1x1x7x16xbf16> to vector<1x7x16xbf16>
      %250 = vector.shape_cast %246 : vector<1x7x16xbf16> to vector<1x1x7x16xbf16>
      tpu.vector_store %arg5[%c0_142, %247, %c0_143, %c0_144], %250 {strides = array<i32>} : memref<1x7x7x16xbf16, #tpu.memory_space<vmem>>, vector<1x1x7x16xbf16>,
    }
    %c7_i32_2 = arith.constant 7 : i32
    return
  }
  func.func @transform_0(%arg0: i32) -> (i32, i32, i32, i32) {
    %c0_i32 = arith.constant 0 : i32
    %c0_i32_0 = arith.constant 0 : i32
    %c0_i32_1 = arith.constant 0 : i32
    %c0_i32_2 = arith.constant 0 : i32
    return %arg0, %c0_i32, %c0_i32_0, %c0_i32_1 : i32, i32, i32, i32
  }
  func.func @transform_1(%arg0: i32) -> (i32, i32, i32, i32) {
    %c0_i32 = arith.constant 0 : i32
    %c0_i32_0 = arith.constant 0 : i32
    %c0_i32_1 = arith.constant 0 : i32
    %c0_i32_2 = arith.constant 0 : i32
    return %arg0, %c0_i32, %c0_i32_0, %c0_i32_1 : i32, i32, i32, i32
  }
  func.func @transform_2(%arg0: i32) -> (i32, i32, i32) {
    %c0_i32 = arith.constant 0 : i32
    %c0_i32_0 = arith.constant 0 : i32
    %c0_i32_1 = arith.constant 0 : i32
    %c0_i32_2 = arith.constant 0 : i32
    return %c0_i32, %c0_i32_0, %c0_i32_1 : i32, i32, i32
  }
  func.func @transform_3(%arg0: i32) -> (i32, i32) {
    %c0_i32 = arith.constant 0 : i32
    %c0_i32_0 = arith.constant 0 : i32
    %c0_i32_1 = arith.constant 0 : i32
    return %c0_i32, %c0_i32_0 : i32, i32
  }
  func.func @transform_4(%arg0: i32) -> (i32, i32, i32, i32) {
    %c0_i32 = arith.constant 0 : i32
    %c0_i32_0 = arith.constant 0 : i32
    %c0_i32_1 = arith.constant 0 : i32
    %c0_i32_2 = arith.constant 0 : i32
    return %arg0, %c0_i32, %c0_i32_0, %c0_i32_1 : i32, i32, i32, i32
  }
}

module attributes {stable_mosaic.version = 11 : i64} {
  func.func @kernel(%arg0: i32, %arg1: memref<1x7x7x16xbf16, #tpu.memory_space<vmem>>, %arg2: memref<9x16x16xbf16, #tpu.memory_space<vmem>>, %arg3: memref<2x16xf32, #tpu.memory_space<vmem>>, %arg4: memref<1x5x5x16xbf16, #tpu.memory_space<vmem>>) attributes {dimension_semantics = [#tpu.dimension_semantics<parallel>], iteration_bounds = array<i64: 2>, scalar_prefetch = 0 : i64, scratch_operands = 0 : i64, tpu.core_type = #tpu.core_type<tc>, window_params = [{transform_indices = @transform_0, window_bounds = array<i64: 1, 7, 7, 16>}, {pipeline_mode = #tpu.pipeline_mode<synchronous>, transform_indices = @transform_1, window_bounds = array<i64: 9, 16, 16>}, {pipeline_mode = #tpu.pipeline_mode<synchronous>, transform_indices = @transform_2, window_bounds = array<i64: 2, 16>}, {transform_indices = @transform_3, window_bounds = array<i64: 1, 5, 5, 16>}]} {
    %c0 = arith.constant 0 : index
    %c0_0 = arith.constant 0 : index
    %0 = vector.load %arg3[%c0, %c0_0] : memref<2x16xf32, #tpu.memory_space<vmem>>, vector<1x16xf32>
    %c1 = arith.constant 1 : index
    %c0_1 = arith.constant 0 : index
    %1 = vector.load %arg3[%c1, %c0_1] : memref<2x16xf32, #tpu.memory_space<vmem>>, vector<1x16xf32>
    %c0_i32 = arith.constant 0 : i32
    %c5_i32 = arith.constant 5 : i32
    %2 = arith.addi %c0_i32, %c5_i32 : i32
    %c1_i32 = arith.constant 1 : i32
    scf.for %arg5 = %c0_i32 to %2 step %c1_i32  : i32 {
      %cst = arith.constant 0.000000e+00 : f32
      %3 = vector.broadcast %cst : f32 to vector<5x16xf32>
      %c0_i32_3 = arith.constant 0 : i32
      %4 = arith.addi %arg5, %c0_i32_3 : i32
      %c0_4 = arith.constant 0 : index
      %5 = arith.index_cast %4 : i32 to index
      %c0_5 = arith.constant 0 : index
      %c0_6 = arith.constant 0 : index
      %6 = vector.load %arg1[%c0_4, %5, %c0_5, %c0_6] : memref<1x7x7x16xbf16, #tpu.memory_space<vmem>>, vector<1x1x7x16xbf16>
      %7 = vector.shape_cast %6 : vector<1x1x7x16xbf16> to vector<1x7x16xbf16>
      %8 = vector.shape_cast %7 : vector<1x7x16xbf16> to vector<7x16xbf16>
      %9 = vector.extract_strided_slice %8 {offsets = [0, 0], sizes = [5, 16], strides = [1, 1]} : vector<7x16xbf16> to vector<5x16xbf16>
      %c0_7 = arith.constant 0 : index
      %c0_8 = arith.constant 0 : index
      %c0_9 = arith.constant 0 : index
      %10 = vector.load %arg2[%c0_7, %c0_8, %c0_9] : memref<9x16x16xbf16, #tpu.memory_space<vmem>>, vector<1x16x16xbf16>
      %11 = vector.shape_cast %10 : vector<1x16x16xbf16> to vector<16x16xbf16>
      %cst_10 = arith.constant dense<0.000000e+00> : vector<5x16xf32>
      %12 = tpu.matmul %9, %11, %cst_10 {dimension_numbers = #tpu.dot_dimension_numbers<[1], [0], [0], [1], [0, 0, 1, 1], [], []>} : vector<5x16xbf16>, vector<16x16xbf16>, vector<5x16xf32> -> vector<5x16xf32>
      %13 = arith.addf %3, %12 : vector<5x16xf32>
      %14 = vector.extract_strided_slice %8 {offsets = [1, 0], sizes = [5, 16], strides = [1, 1]} : vector<7x16xbf16> to vector<5x16xbf16>
      %c1_11 = arith.constant 1 : index
      %c0_12 = arith.constant 0 : index
      %c0_13 = arith.constant 0 : index
      %15 = vector.load %arg2[%c1_11, %c0_12, %c0_13] : memref<9x16x16xbf16, #tpu.memory_space<vmem>>, vector<1x16x16xbf16>
      %16 = vector.shape_cast %15 : vector<1x16x16xbf16> to vector<16x16xbf16>
      %cst_14 = arith.constant dense<0.000000e+00> : vector<5x16xf32>
      %17 = tpu.matmul %14, %16, %cst_14 {dimension_numbers = #tpu.dot_dimension_numbers<[1], [0], [0], [1], [0, 0, 1, 1], [], []>} : vector<5x16xbf16>, vector<16x16xbf16>, vector<5x16xf32> -> vector<5x16xf32>
      %18 = arith.addf %13, %17 : vector<5x16xf32>
      %19 = vector.extract_strided_slice %8 {offsets = [2, 0], sizes = [5, 16], strides = [1, 1]} : vector<7x16xbf16> to vector<5x16xbf16>
      %c2 = arith.constant 2 : index
      %c0_15 = arith.constant 0 : index
      %c0_16 = arith.constant 0 : index
      %20 = vector.load %arg2[%c2, %c0_15, %c0_16] : memref<9x16x16xbf16, #tpu.memory_space<vmem>>, vector<1x16x16xbf16>
      %21 = vector.shape_cast %20 : vector<1x16x16xbf16> to vector<16x16xbf16>
      %cst_17 = arith.constant dense<0.000000e+00> : vector<5x16xf32>
      %22 = tpu.matmul %19, %21, %cst_17 {dimension_numbers = #tpu.dot_dimension_numbers<[1], [0], [0], [1], [0, 0, 1, 1], [], []>} : vector<5x16xbf16>, vector<16x16xbf16>, vector<5x16xf32> -> vector<5x16xf32>
      %23 = arith.addf %18, %22 : vector<5x16xf32>
      %c1_i32_18 = arith.constant 1 : i32
      %24 = arith.addi %arg5, %c1_i32_18 : i32
      %c0_19 = arith.constant 0 : index
      %25 = arith.index_cast %24 : i32 to index
      %c0_20 = arith.constant 0 : index
      %c0_21 = arith.constant 0 : index
      %26 = vector.load %arg1[%c0_19, %25, %c0_20, %c0_21] : memref<1x7x7x16xbf16, #tpu.memory_space<vmem>>, vector<1x1x7x16xbf16>
      %27 = vector.shape_cast %26 : vector<1x1x7x16xbf16> to vector<1x7x16xbf16>
      %28 = vector.shape_cast %27 : vector<1x7x16xbf16> to vector<7x16xbf16>
      %29 = vector.extract_strided_slice %28 {offsets = [0, 0], sizes = [5, 16], strides = [1, 1]} : vector<7x16xbf16> to vector<5x16xbf16>
      %c3 = arith.constant 3 : index
      %c0_22 = arith.constant 0 : index
      %c0_23 = arith.constant 0 : index
      %30 = vector.load %arg2[%c3, %c0_22, %c0_23] : memref<9x16x16xbf16, #tpu.memory_space<vmem>>, vector<1x16x16xbf16>
      %31 = vector.shape_cast %30 : vector<1x16x16xbf16> to vector<16x16xbf16>
      %cst_24 = arith.constant dense<0.000000e+00> : vector<5x16xf32>
      %32 = tpu.matmul %29, %31, %cst_24 {dimension_numbers = #tpu.dot_dimension_numbers<[1], [0], [0], [1], [0, 0, 1, 1], [], []>} : vector<5x16xbf16>, vector<16x16xbf16>, vector<5x16xf32> -> vector<5x16xf32>
      %33 = arith.addf %23, %32 : vector<5x16xf32>
      %34 = vector.extract_strided_slice %28 {offsets = [1, 0], sizes = [5, 16], strides = [1, 1]} : vector<7x16xbf16> to vector<5x16xbf16>
      %c4 = arith.constant 4 : index
      %c0_25 = arith.constant 0 : index
      %c0_26 = arith.constant 0 : index
      %35 = vector.load %arg2[%c4, %c0_25, %c0_26] : memref<9x16x16xbf16, #tpu.memory_space<vmem>>, vector<1x16x16xbf16>
      %36 = vector.shape_cast %35 : vector<1x16x16xbf16> to vector<16x16xbf16>
      %cst_27 = arith.constant dense<0.000000e+00> : vector<5x16xf32>
      %37 = tpu.matmul %34, %36, %cst_27 {dimension_numbers = #tpu.dot_dimension_numbers<[1], [0], [0], [1], [0, 0, 1, 1], [], []>} : vector<5x16xbf16>, vector<16x16xbf16>, vector<5x16xf32> -> vector<5x16xf32>
      %38 = arith.addf %33, %37 : vector<5x16xf32>
      %39 = vector.extract_strided_slice %28 {offsets = [2, 0], sizes = [5, 16], strides = [1, 1]} : vector<7x16xbf16> to vector<5x16xbf16>
      %c5 = arith.constant 5 : index
      %c0_28 = arith.constant 0 : index
      %c0_29 = arith.constant 0 : index
      %40 = vector.load %arg2[%c5, %c0_28, %c0_29] : memref<9x16x16xbf16, #tpu.memory_space<vmem>>, vector<1x16x16xbf16>
      %41 = vector.shape_cast %40 : vector<1x16x16xbf16> to vector<16x16xbf16>
      %cst_30 = arith.constant dense<0.000000e+00> : vector<5x16xf32>
      %42 = tpu.matmul %39, %41, %cst_30 {dimension_numbers = #tpu.dot_dimension_numbers<[1], [0], [0], [1], [0, 0, 1, 1], [], []>} : vector<5x16xbf16>, vector<16x16xbf16>, vector<5x16xf32> -> vector<5x16xf32>
      %43 = arith.addf %38, %42 : vector<5x16xf32>
      %c2_i32 = arith.constant 2 : i32
      %44 = arith.addi %arg5, %c2_i32 : i32
      %c0_31 = arith.constant 0 : index
      %45 = arith.index_cast %44 : i32 to index
      %c0_32 = arith.constant 0 : index
      %c0_33 = arith.constant 0 : index
      %46 = vector.load %arg1[%c0_31, %45, %c0_32, %c0_33] : memref<1x7x7x16xbf16, #tpu.memory_space<vmem>>, vector<1x1x7x16xbf16>
      %47 = vector.shape_cast %46 : vector<1x1x7x16xbf16> to vector<1x7x16xbf16>
      %48 = vector.shape_cast %47 : vector<1x7x16xbf16> to vector<7x16xbf16>
      %49 = vector.extract_strided_slice %48 {offsets = [0, 0], sizes = [5, 16], strides = [1, 1]} : vector<7x16xbf16> to vector<5x16xbf16>
      %c6 = arith.constant 6 : index
      %c0_34 = arith.constant 0 : index
      %c0_35 = arith.constant 0 : index
      %50 = vector.load %arg2[%c6, %c0_34, %c0_35] : memref<9x16x16xbf16, #tpu.memory_space<vmem>>, vector<1x16x16xbf16>
      %51 = vector.shape_cast %50 : vector<1x16x16xbf16> to vector<16x16xbf16>
      %cst_36 = arith.constant dense<0.000000e+00> : vector<5x16xf32>
      %52 = tpu.matmul %49, %51, %cst_36 {dimension_numbers = #tpu.dot_dimension_numbers<[1], [0], [0], [1], [0, 0, 1, 1], [], []>} : vector<5x16xbf16>, vector<16x16xbf16>, vector<5x16xf32> -> vector<5x16xf32>
      %53 = arith.addf %43, %52 : vector<5x16xf32>
      %54 = vector.extract_strided_slice %48 {offsets = [1, 0], sizes = [5, 16], strides = [1, 1]} : vector<7x16xbf16> to vector<5x16xbf16>
      %c7 = arith.constant 7 : index
      %c0_37 = arith.constant 0 : index
      %c0_38 = arith.constant 0 : index
      %55 = vector.load %arg2[%c7, %c0_37, %c0_38] : memref<9x16x16xbf16, #tpu.memory_space<vmem>>, vector<1x16x16xbf16>
      %56 = vector.shape_cast %55 : vector<1x16x16xbf16> to vector<16x16xbf16>
      %cst_39 = arith.constant dense<0.000000e+00> : vector<5x16xf32>
      %57 = tpu.matmul %54, %56, %cst_39 {dimension_numbers = #tpu.dot_dimension_numbers<[1], [0], [0], [1], [0, 0, 1, 1], [], []>} : vector<5x16xbf16>, vector<16x16xbf16>, vector<5x16xf32> -> vector<5x16xf32>
      %58 = arith.addf %53, %57 : vector<5x16xf32>
      %59 = vector.extract_strided_slice %48 {offsets = [2, 0], sizes = [5, 16], strides = [1, 1]} : vector<7x16xbf16> to vector<5x16xbf16>
      %c8 = arith.constant 8 : index
      %c0_40 = arith.constant 0 : index
      %c0_41 = arith.constant 0 : index
      %60 = vector.load %arg2[%c8, %c0_40, %c0_41] : memref<9x16x16xbf16, #tpu.memory_space<vmem>>, vector<1x16x16xbf16>
      %61 = vector.shape_cast %60 : vector<1x16x16xbf16> to vector<16x16xbf16>
      %cst_42 = arith.constant dense<0.000000e+00> : vector<5x16xf32>
      %62 = tpu.matmul %59, %61, %cst_42 {dimension_numbers = #tpu.dot_dimension_numbers<[1], [0], [0], [1], [0, 0, 1, 1], [], []>} : vector<5x16xbf16>, vector<16x16xbf16>, vector<5x16xf32> -> vector<5x16xf32>
      %63 = arith.addf %58, %62 : vector<5x16xf32>
      %64 = vector.broadcast %0 : vector<1x16xf32> to vector<5x16xf32>
      %65 = arith.addf %63, %64 : vector<5x16xf32>
      %cst_43 = arith.constant 0.000000e+00 : f32
      %66 = vector.broadcast %cst_43 : f32 to vector<5x16xf32>
      %67 = arith.cmpf ogt, %65, %66 : vector<5x16xf32>
      %68 = vector.broadcast %1 : vector<1x16xf32> to vector<5x16xf32>
      %69 = arith.mulf %68, %65 : vector<5x16xf32>
      %70 = arith.select %67, %65, %69 : vector<5x16xi1>, vector<5x16xf32>
      %71 = vector.shape_cast %70 : vector<5x16xf32> to vector<1x5x16xf32>
      %72 = arith.truncf %71 : vector<1x5x16xf32> to vector<1x5x16xbf16>
      %c0_44 = arith.constant 0 : index
      %73 = arith.index_cast %arg5 : i32 to index
      %c0_45 = arith.constant 0 : index
      %c0_46 = arith.constant 0 : index
      %74 = vector.load %arg4[%c0_44, %73, %c0_45, %c0_46] : memref<1x5x5x16xbf16, #tpu.memory_space<vmem>>, vector<1x1x5x16xbf16>
      %75 = vector.shape_cast %74 : vector<1x1x5x16xbf16> to vector<1x5x16xbf16>
      %76 = vector.shape_cast %72 : vector<1x5x16xbf16> to vector<1x1x5x16xbf16>
      tpu.vector_store %arg4[%c0_44, %73, %c0_45, %c0_46], %76 {strides = array<i32>} : memref<1x5x5x16xbf16, #tpu.memory_space<vmem>>, vector<1x1x5x16xbf16>,
    }
    %c5_i32_2 = arith.constant 5 : i32
    return
  }
  func.func @transform_0(%arg0: i32) -> (i32, i32, i32, i32) {
    %c0_i32 = arith.constant 0 : i32
    %c0_i32_0 = arith.constant 0 : i32
    %c0_i32_1 = arith.constant 0 : i32
    %c0_i32_2 = arith.constant 0 : i32
    return %arg0, %c0_i32, %c0_i32_0, %c0_i32_1 : i32, i32, i32, i32
  }
  func.func @transform_1(%arg0: i32) -> (i32, i32, i32) {
    %c0_i32 = arith.constant 0 : i32
    %c0_i32_0 = arith.constant 0 : i32
    %c0_i32_1 = arith.constant 0 : i32
    %c0_i32_2 = arith.constant 0 : i32
    return %c0_i32, %c0_i32_0, %c0_i32_1 : i32, i32, i32
  }
  func.func @transform_2(%arg0: i32) -> (i32, i32) {
    %c0_i32 = arith.constant 0 : i32
    %c0_i32_0 = arith.constant 0 : i32
    %c0_i32_1 = arith.constant 0 : i32
    return %c0_i32, %c0_i32_0 : i32, i32
  }
  func.func @transform_3(%arg0: i32) -> (i32, i32, i32, i32) {
    %c0_i32 = arith.constant 0 : i32
    %c0_i32_0 = arith.constant 0 : i32
    %c0_i32_1 = arith.constant 0 : i32
    %c0_i32_2 = arith.constant 0 : i32
    return %arg0, %c0_i32, %c0_i32_0, %c0_i32_1 : i32, i32, i32, i32
  }
}

module attributes {stable_mosaic.version = 11 : i64} {
  func.func @kernel(%arg0: i32, %arg1: memref<1x5x5x16xbf16, #tpu.memory_space<vmem>>, %arg2: memref<9x16x32xbf16, #tpu.memory_space<vmem>>, %arg3: memref<2x32xf32, #tpu.memory_space<vmem>>, %arg4: memref<1x3x3x32xf32, #tpu.memory_space<vmem>>) attributes {dimension_semantics = [#tpu.dimension_semantics<parallel>], iteration_bounds = array<i64: 2>, scalar_prefetch = 0 : i64, scratch_operands = 0 : i64, tpu.core_type = #tpu.core_type<tc>, window_params = [{transform_indices = @transform_0, window_bounds = array<i64: 1, 5, 5, 16>}, {pipeline_mode = #tpu.pipeline_mode<synchronous>, transform_indices = @transform_1, window_bounds = array<i64: 9, 16, 32>}, {pipeline_mode = #tpu.pipeline_mode<synchronous>, transform_indices = @transform_2, window_bounds = array<i64: 2, 32>}, {transform_indices = @transform_3, window_bounds = array<i64: 1, 3, 3, 32>}]} {
    %c0 = arith.constant 0 : index
    %c0_0 = arith.constant 0 : index
    %0 = vector.load %arg3[%c0, %c0_0] : memref<2x32xf32, #tpu.memory_space<vmem>>, vector<1x32xf32>
    %c1 = arith.constant 1 : index
    %c0_1 = arith.constant 0 : index
    %1 = vector.load %arg3[%c1, %c0_1] : memref<2x32xf32, #tpu.memory_space<vmem>>, vector<1x32xf32>
    %c0_i32 = arith.constant 0 : i32
    %c3_i32 = arith.constant 3 : i32
    %2 = arith.addi %c0_i32, %c3_i32 : i32
    %c1_i32 = arith.constant 1 : i32
    scf.for %arg5 = %c0_i32 to %2 step %c1_i32  : i32 {
      %cst = arith.constant 0.000000e+00 : f32
      %3 = vector.broadcast %cst : f32 to vector<3x32xf32>
      %c0_i32_3 = arith.constant 0 : i32
      %4 = arith.addi %arg5, %c0_i32_3 : i32
      %c0_4 = arith.constant 0 : index
      %5 = arith.index_cast %4 : i32 to index
      %c0_5 = arith.constant 0 : index
      %c0_6 = arith.constant 0 : index
      %6 = vector.load %arg1[%c0_4, %5, %c0_5, %c0_6] : memref<1x5x5x16xbf16, #tpu.memory_space<vmem>>, vector<1x1x5x16xbf16>
      %7 = vector.shape_cast %6 : vector<1x1x5x16xbf16> to vector<1x5x16xbf16>
      %8 = vector.shape_cast %7 : vector<1x5x16xbf16> to vector<5x16xbf16>
      %9 = vector.extract_strided_slice %8 {offsets = [0, 0], sizes = [3, 16], strides = [1, 1]} : vector<5x16xbf16> to vector<3x16xbf16>
      %c0_7 = arith.constant 0 : index
      %c0_8 = arith.constant 0 : index
      %c0_9 = arith.constant 0 : index
      %10 = vector.load %arg2[%c0_7, %c0_8, %c0_9] : memref<9x16x32xbf16, #tpu.memory_space<vmem>>, vector<1x16x32xbf16>
      %11 = vector.shape_cast %10 : vector<1x16x32xbf16> to vector<16x32xbf16>
      %cst_10 = arith.constant dense<0.000000e+00> : vector<3x32xf32>
      %12 = tpu.matmul %9, %11, %cst_10 {dimension_numbers = #tpu.dot_dimension_numbers<[1], [0], [0], [1], [0, 0, 1, 1], [], []>} : vector<3x16xbf16>, vector<16x32xbf16>, vector<3x32xf32> -> vector<3x32xf32>
      %13 = arith.addf %3, %12 : vector<3x32xf32>
      %14 = vector.extract_strided_slice %8 {offsets = [1, 0], sizes = [3, 16], strides = [1, 1]} : vector<5x16xbf16> to vector<3x16xbf16>
      %c1_11 = arith.constant 1 : index
      %c0_12 = arith.constant 0 : index
      %c0_13 = arith.constant 0 : index
      %15 = vector.load %arg2[%c1_11, %c0_12, %c0_13] : memref<9x16x32xbf16, #tpu.memory_space<vmem>>, vector<1x16x32xbf16>
      %16 = vector.shape_cast %15 : vector<1x16x32xbf16> to vector<16x32xbf16>
      %cst_14 = arith.constant dense<0.000000e+00> : vector<3x32xf32>
      %17 = tpu.matmul %14, %16, %cst_14 {dimension_numbers = #tpu.dot_dimension_numbers<[1], [0], [0], [1], [0, 0, 1, 1], [], []>} : vector<3x16xbf16>, vector<16x32xbf16>, vector<3x32xf32> -> vector<3x32xf32>
      %18 = arith.addf %13, %17 : vector<3x32xf32>
      %19 = vector.extract_strided_slice %8 {offsets = [2, 0], sizes = [3, 16], strides = [1, 1]} : vector<5x16xbf16> to vector<3x16xbf16>
      %c2 = arith.constant 2 : index
      %c0_15 = arith.constant 0 : index
      %c0_16 = arith.constant 0 : index
      %20 = vector.load %arg2[%c2, %c0_15, %c0_16] : memref<9x16x32xbf16, #tpu.memory_space<vmem>>, vector<1x16x32xbf16>
      %21 = vector.shape_cast %20 : vector<1x16x32xbf16> to vector<16x32xbf16>
      %cst_17 = arith.constant dense<0.000000e+00> : vector<3x32xf32>
      %22 = tpu.matmul %19, %21, %cst_17 {dimension_numbers = #tpu.dot_dimension_numbers<[1], [0], [0], [1], [0, 0, 1, 1], [], []>} : vector<3x16xbf16>, vector<16x32xbf16>, vector<3x32xf32> -> vector<3x32xf32>
      %23 = arith.addf %18, %22 : vector<3x32xf32>
      %c1_i32_18 = arith.constant 1 : i32
      %24 = arith.addi %arg5, %c1_i32_18 : i32
      %c0_19 = arith.constant 0 : index
      %25 = arith.index_cast %24 : i32 to index
      %c0_20 = arith.constant 0 : index
      %c0_21 = arith.constant 0 : index
      %26 = vector.load %arg1[%c0_19, %25, %c0_20, %c0_21] : memref<1x5x5x16xbf16, #tpu.memory_space<vmem>>, vector<1x1x5x16xbf16>
      %27 = vector.shape_cast %26 : vector<1x1x5x16xbf16> to vector<1x5x16xbf16>
      %28 = vector.shape_cast %27 : vector<1x5x16xbf16> to vector<5x16xbf16>
      %29 = vector.extract_strided_slice %28 {offsets = [0, 0], sizes = [3, 16], strides = [1, 1]} : vector<5x16xbf16> to vector<3x16xbf16>
      %c3 = arith.constant 3 : index
      %c0_22 = arith.constant 0 : index
      %c0_23 = arith.constant 0 : index
      %30 = vector.load %arg2[%c3, %c0_22, %c0_23] : memref<9x16x32xbf16, #tpu.memory_space<vmem>>, vector<1x16x32xbf16>
      %31 = vector.shape_cast %30 : vector<1x16x32xbf16> to vector<16x32xbf16>
      %cst_24 = arith.constant dense<0.000000e+00> : vector<3x32xf32>
      %32 = tpu.matmul %29, %31, %cst_24 {dimension_numbers = #tpu.dot_dimension_numbers<[1], [0], [0], [1], [0, 0, 1, 1], [], []>} : vector<3x16xbf16>, vector<16x32xbf16>, vector<3x32xf32> -> vector<3x32xf32>
      %33 = arith.addf %23, %32 : vector<3x32xf32>
      %34 = vector.extract_strided_slice %28 {offsets = [1, 0], sizes = [3, 16], strides = [1, 1]} : vector<5x16xbf16> to vector<3x16xbf16>
      %c4 = arith.constant 4 : index
      %c0_25 = arith.constant 0 : index
      %c0_26 = arith.constant 0 : index
      %35 = vector.load %arg2[%c4, %c0_25, %c0_26] : memref<9x16x32xbf16, #tpu.memory_space<vmem>>, vector<1x16x32xbf16>
      %36 = vector.shape_cast %35 : vector<1x16x32xbf16> to vector<16x32xbf16>
      %cst_27 = arith.constant dense<0.000000e+00> : vector<3x32xf32>
      %37 = tpu.matmul %34, %36, %cst_27 {dimension_numbers = #tpu.dot_dimension_numbers<[1], [0], [0], [1], [0, 0, 1, 1], [], []>} : vector<3x16xbf16>, vector<16x32xbf16>, vector<3x32xf32> -> vector<3x32xf32>
      %38 = arith.addf %33, %37 : vector<3x32xf32>
      %39 = vector.extract_strided_slice %28 {offsets = [2, 0], sizes = [3, 16], strides = [1, 1]} : vector<5x16xbf16> to vector<3x16xbf16>
      %c5 = arith.constant 5 : index
      %c0_28 = arith.constant 0 : index
      %c0_29 = arith.constant 0 : index
      %40 = vector.load %arg2[%c5, %c0_28, %c0_29] : memref<9x16x32xbf16, #tpu.memory_space<vmem>>, vector<1x16x32xbf16>
      %41 = vector.shape_cast %40 : vector<1x16x32xbf16> to vector<16x32xbf16>
      %cst_30 = arith.constant dense<0.000000e+00> : vector<3x32xf32>
      %42 = tpu.matmul %39, %41, %cst_30 {dimension_numbers = #tpu.dot_dimension_numbers<[1], [0], [0], [1], [0, 0, 1, 1], [], []>} : vector<3x16xbf16>, vector<16x32xbf16>, vector<3x32xf32> -> vector<3x32xf32>
      %43 = arith.addf %38, %42 : vector<3x32xf32>
      %c2_i32 = arith.constant 2 : i32
      %44 = arith.addi %arg5, %c2_i32 : i32
      %c0_31 = arith.constant 0 : index
      %45 = arith.index_cast %44 : i32 to index
      %c0_32 = arith.constant 0 : index
      %c0_33 = arith.constant 0 : index
      %46 = vector.load %arg1[%c0_31, %45, %c0_32, %c0_33] : memref<1x5x5x16xbf16, #tpu.memory_space<vmem>>, vector<1x1x5x16xbf16>
      %47 = vector.shape_cast %46 : vector<1x1x5x16xbf16> to vector<1x5x16xbf16>
      %48 = vector.shape_cast %47 : vector<1x5x16xbf16> to vector<5x16xbf16>
      %49 = vector.extract_strided_slice %48 {offsets = [0, 0], sizes = [3, 16], strides = [1, 1]} : vector<5x16xbf16> to vector<3x16xbf16>
      %c6 = arith.constant 6 : index
      %c0_34 = arith.constant 0 : index
      %c0_35 = arith.constant 0 : index
      %50 = vector.load %arg2[%c6, %c0_34, %c0_35] : memref<9x16x32xbf16, #tpu.memory_space<vmem>>, vector<1x16x32xbf16>
      %51 = vector.shape_cast %50 : vector<1x16x32xbf16> to vector<16x32xbf16>
      %cst_36 = arith.constant dense<0.000000e+00> : vector<3x32xf32>
      %52 = tpu.matmul %49, %51, %cst_36 {dimension_numbers = #tpu.dot_dimension_numbers<[1], [0], [0], [1], [0, 0, 1, 1], [], []>} : vector<3x16xbf16>, vector<16x32xbf16>, vector<3x32xf32> -> vector<3x32xf32>
      %53 = arith.addf %43, %52 : vector<3x32xf32>
      %54 = vector.extract_strided_slice %48 {offsets = [1, 0], sizes = [3, 16], strides = [1, 1]} : vector<5x16xbf16> to vector<3x16xbf16>
      %c7 = arith.constant 7 : index
      %c0_37 = arith.constant 0 : index
      %c0_38 = arith.constant 0 : index
      %55 = vector.load %arg2[%c7, %c0_37, %c0_38] : memref<9x16x32xbf16, #tpu.memory_space<vmem>>, vector<1x16x32xbf16>
      %56 = vector.shape_cast %55 : vector<1x16x32xbf16> to vector<16x32xbf16>
      %cst_39 = arith.constant dense<0.000000e+00> : vector<3x32xf32>
      %57 = tpu.matmul %54, %56, %cst_39 {dimension_numbers = #tpu.dot_dimension_numbers<[1], [0], [0], [1], [0, 0, 1, 1], [], []>} : vector<3x16xbf16>, vector<16x32xbf16>, vector<3x32xf32> -> vector<3x32xf32>
      %58 = arith.addf %53, %57 : vector<3x32xf32>
      %59 = vector.extract_strided_slice %48 {offsets = [2, 0], sizes = [3, 16], strides = [1, 1]} : vector<5x16xbf16> to vector<3x16xbf16>
      %c8 = arith.constant 8 : index
      %c0_40 = arith.constant 0 : index
      %c0_41 = arith.constant 0 : index
      %60 = vector.load %arg2[%c8, %c0_40, %c0_41] : memref<9x16x32xbf16, #tpu.memory_space<vmem>>, vector<1x16x32xbf16>
      %61 = vector.shape_cast %60 : vector<1x16x32xbf16> to vector<16x32xbf16>
      %cst_42 = arith.constant dense<0.000000e+00> : vector<3x32xf32>
      %62 = tpu.matmul %59, %61, %cst_42 {dimension_numbers = #tpu.dot_dimension_numbers<[1], [0], [0], [1], [0, 0, 1, 1], [], []>} : vector<3x16xbf16>, vector<16x32xbf16>, vector<3x32xf32> -> vector<3x32xf32>
      %63 = arith.addf %58, %62 : vector<3x32xf32>
      %64 = vector.broadcast %0 : vector<1x32xf32> to vector<3x32xf32>
      %65 = arith.addf %63, %64 : vector<3x32xf32>
      %cst_43 = arith.constant 0.000000e+00 : f32
      %66 = vector.broadcast %cst_43 : f32 to vector<3x32xf32>
      %67 = arith.cmpf ogt, %65, %66 : vector<3x32xf32>
      %68 = vector.broadcast %1 : vector<1x32xf32> to vector<3x32xf32>
      %69 = arith.mulf %68, %65 : vector<3x32xf32>
      %70 = arith.select %67, %65, %69 : vector<3x32xi1>, vector<3x32xf32>
      %71 = vector.shape_cast %70 : vector<3x32xf32> to vector<1x3x32xf32>
      %c0_44 = arith.constant 0 : index
      %72 = arith.index_cast %arg5 : i32 to index
      %c0_45 = arith.constant 0 : index
      %c0_46 = arith.constant 0 : index
      %73 = vector.load %arg4[%c0_44, %72, %c0_45, %c0_46] : memref<1x3x3x32xf32, #tpu.memory_space<vmem>>, vector<1x1x3x32xf32>
      %74 = vector.shape_cast %73 : vector<1x1x3x32xf32> to vector<1x3x32xf32>
      %75 = vector.shape_cast %71 : vector<1x3x32xf32> to vector<1x1x3x32xf32>
      tpu.vector_store %arg4[%c0_44, %72, %c0_45, %c0_46], %75 {strides = array<i32>} : memref<1x3x3x32xf32, #tpu.memory_space<vmem>>, vector<1x1x3x32xf32>,
    }
    %c3_i32_2 = arith.constant 3 : i32
    return
  }
  func.func @transform_0(%arg0: i32) -> (i32, i32, i32, i32) {
    %c0_i32 = arith.constant 0 : i32
    %c0_i32_0 = arith.constant 0 : i32
    %c0_i32_1 = arith.constant 0 : i32
    %c0_i32_2 = arith.constant 0 : i32
    return %arg0, %c0_i32, %c0_i32_0, %c0_i32_1 : i32, i32, i32, i32
  }
  func.func @transform_1(%arg0: i32) -> (i32, i32, i32) {
    %c0_i32 = arith.constant 0 : i32
    %c0_i32_0 = arith.constant 0 : i32
    %c0_i32_1 = arith.constant 0 : i32
    %c0_i32_2 = arith.constant 0 : i32
    return %c0_i32, %c0_i32_0, %c0_i32_1 : i32, i32, i32
  }
  func.func @transform_2(%arg0: i32) -> (i32, i32) {
    %c0_i32 = arith.constant 0 : i32
    %c0_i32_0 = arith.constant 0 : i32
    %c0_i32_1 = arith.constant 0 : i32
    return %c0_i32, %c0_i32_0 : i32, i32
  }
  func.func @transform_3(%arg0: i32) -> (i32, i32, i32, i32) {
    %c0_i32 = arith.constant 0 : i32
    %c0_i32_0 = arith.constant 0 : i32
    %c0_i32_1 = arith.constant 0 : i32
    %c0_i32_2 = arith.constant 0 : i32
    return %arg0, %c0_i32, %c0_i32_0, %c0_i32_1 : i32, i32, i32, i32
  }
}

module attributes {stable_mosaic.version = 11 : i64} {
  func.func @_heads_kernel(%arg0: i32, %arg1: memref<16x32xf32, #tpu.memory_space<vmem>>, %arg2: memref<32x6xf32, #tpu.memory_space<vmem>>, %arg3: memref<1x6xf32, #tpu.memory_space<vmem>>, %arg4: memref<16x6xf32, #tpu.memory_space<vmem>>) attributes {dimension_semantics = [#tpu.dimension_semantics<parallel>], iteration_bounds = array<i64: 2>, scalar_prefetch = 0 : i64, scratch_operands = 0 : i64, tpu.core_type = #tpu.core_type<tc>, window_params = [{transform_indices = @transform_0, window_bounds = array<i64: 16, 32>}, {pipeline_mode = #tpu.pipeline_mode<synchronous>, transform_indices = @transform_1, window_bounds = array<i64: 32, 6>}, {pipeline_mode = #tpu.pipeline_mode<synchronous>, transform_indices = @transform_2, window_bounds = array<i64: 1, 6>}, {transform_indices = @transform_3, window_bounds = array<i64: 16, 6>}]} {
    %c0 = arith.constant 0 : index
    %c0_0 = arith.constant 0 : index
    %0 = vector.load %arg1[%c0, %c0_0] : memref<16x32xf32, #tpu.memory_space<vmem>>, vector<16x32xf32>
    %c0_1 = arith.constant 0 : index
    %c0_2 = arith.constant 0 : index
    %1 = vector.load %arg2[%c0_1, %c0_2] : memref<32x6xf32, #tpu.memory_space<vmem>>, vector<32x6xf32>
    %cst = arith.constant dense<0.000000e+00> : vector<16x6xf32>
    %2 = tpu.matmul %0, %1, %cst {dimension_numbers = #tpu.dot_dimension_numbers<[1], [0], [0], [1], [0, 0, 1, 1], [], []>} : vector<16x32xf32>, vector<32x6xf32>, vector<16x6xf32> -> vector<16x6xf32>
    %c0_3 = arith.constant 0 : index
    %c0_4 = arith.constant 0 : index
    %3 = vector.load %arg3[%c0_3, %c0_4] : memref<1x6xf32, #tpu.memory_space<vmem>>, vector<1x6xf32>
    %4 = vector.broadcast %3 : vector<1x6xf32> to vector<16x6xf32>
    %5 = arith.addf %2, %4 : vector<16x6xf32>
    %6 = vector.extract_strided_slice %5 {offsets = [0, 0], sizes = [16, 1], strides = [1, 1]} : vector<16x6xf32> to vector<16x1xf32>
    %7 = vector.extract_strided_slice %5 {offsets = [0, 1], sizes = [16, 1], strides = [1, 1]} : vector<16x6xf32> to vector<16x1xf32>
    %8 = arith.subf %6, %7 : vector<16x1xf32>
    %9 = math.exp %8 : vector<16x1xf32>
    %cst_5 = arith.constant 1.000000e+00 : f32
    %10 = vector.broadcast %cst_5 : f32 to vector<16x1xf32>
    %11 = arith.addf %10, %9 : vector<16x1xf32>
    %cst_6 = arith.constant 1.000000e+00 : f32
    %12 = vector.broadcast %cst_6 : f32 to vector<16x1xf32>
    %13 = arith.divf %12, %11 : vector<16x1xf32>
    %cst_7 = arith.constant 1.000000e+00 : f32
    %14 = vector.broadcast %cst_7 : f32 to vector<16x1xf32>
    %15 = arith.subf %14, %13 : vector<16x1xf32>
    %16 = vector.extract_strided_slice %5 {offsets = [0, 2], sizes = [16, 4], strides = [1, 1]} : vector<16x6xf32> to vector<16x4xf32>
    %17 = tpu.concatenate %15, %13, %16 in 1 : vector<16x1xf32>, vector<16x1xf32>, vector<16x4xf32> -> vector<16x6xf32>
    %c0_8 = arith.constant 0 : index
    %c0_9 = arith.constant 0 : index
    %18 = vector.load %arg4[%c0_8, %c0_9] : memref<16x6xf32, #tpu.memory_space<vmem>>, vector<16x6xf32>
    tpu.vector_store %arg4[%c0_8, %c0_9], %17 {strides = array<i32>} : memref<16x6xf32, #tpu.memory_space<vmem>>, vector<16x6xf32>,
    return
  }
  func.func @transform_0(%arg0: i32) -> (i32, i32) {
    %c0_i32 = arith.constant 0 : i32
    %c0_i32_0 = arith.constant 0 : i32
    return %arg0, %c0_i32 : i32, i32
  }
  func.func @transform_1(%arg0: i32) -> (i32, i32) {
    %c0_i32 = arith.constant 0 : i32
    %c0_i32_0 = arith.constant 0 : i32
    %c0_i32_1 = arith.constant 0 : i32
    return %c0_i32, %c0_i32_0 : i32, i32
  }
  func.func @transform_2(%arg0: i32) -> (i32, i32) {
    %c0_i32 = arith.constant 0 : i32
    %c0_i32_0 = arith.constant 0 : i32
    %c0_i32_1 = arith.constant 0 : i32
    return %c0_i32, %c0_i32_0 : i32, i32
  }
  func.func @transform_3(%arg0: i32) -> (i32, i32) {
    %c0_i32 = arith.constant 0 : i32
    %c0_i32_0 = arith.constant 0 : i32
    return %arg0, %c0_i32 : i32, i32
  }
}

</mosaic_0001>

<bundles_post_ra>
// kernel: pnet_forward.6
= control target key start
LH: loop header
LB: loop body
LE: loop exit
PB: predicated region body
PF: predicated region fallthrough
CT: control target
= control target key end

     0   :  { %s981_s12 = smov 0   ;;  %s1092_s0 = inlined_call_operand.vmem [shape: bf16[2,5,5,16], index: 0, kind: input, shape index: {}]   ;;  %s1093_s1 = inlined_call_operand.vmem [shape: bf16[9,16,32], index: 1, kind: input, shape index: {}]   ;;  %s1094_s2 = inlined_call_operand.vmem [shape: f32[2,32], index: 2, kind: input, shape index: {}]   ;;  %s1095_s3 = inlined_call_operand.vmem [shape: f32[2,3,3,32], index: 3, kind: output, shape index: {}]  }
   0x1 LB: > { %s785_s13 = sadd.s32 4294967295, %s953_s12   ;;  %p789_p0 = scmp.ge.s32.totalorder %s953_s12, 1  ;;  %s953_s12 = sphi %s981_s12, %s13_s12  }
   0x2   : > { %p137_p1 = scmp.lt.s32.totalorder %s953_s12, 3 }
   0x4   : > { %p138_p2 = pnand %p789_p0, %p137_p1 }
   0x5   : > { %p161_p3 = scmp.lt.s32.totalorder (!%p138_p2), %s785_s13, 1  ;;  %s1009_s26 = smov (!%p138_p2), 0  }
   0x6   : > { %141 = sbr.rel (%p138_p2) target bundleno = 260 (0x104), region = 32 }
   0xb   : > { %v992_v0 = vld [vmem:[%s1094_s2] ss:$0 sm:$0xff]  ;;  %v997_v1 = vld [vmem:[%s1094_s2 + $0x1] ss:$0 sm:$0xff]  ;;  %s1097_s13 = smov (!%p161_p3, %s785_s13), 1 }
   0xc   : > { %s911_s18 = smul.u32 20, %s1097_s13 }
   0xd   : > { %s912_s19 = smul.u32 12, %s1097_s13 }
   0xe   : > { %s1002_s22 = scalar_lea.vmem %s1092_s0, %s911_s18 }
   0xf   : > { %s1007_s25 = scalar_lea.vmem %s1095_s3, %s912_s19 }
  0x10 LB: >> { %v931_v2 = vld [vmem:[%s1093_s1 + $0x8] sm:$0xff]   ;;  %v959_v3 = vmov 0.0   ;;  %v932_v4 = vld [vmem:[%s1093_s1] sm:$0xff]   ;;  %vm960_vm0 = vmmov 0   ;;  %s792_s4 = sshll.u32 %s957_s26, 2  ;;  %vm204_vm1 = vcmask 130048   ;;  %s957_s26 = sphi %s1009_s26, %s179_s26  }
  0x11   : >> { %857 = vmatprep.subr.bf16.mxu0 %v959_v3  ;;  %863 = vmatprep.subr.bf16.mxu1 %v959_v3  ;;  %s181_s5 = scalar_lea.vmem %s1002_s22, %s792_s4  ;;  %v935_v6 = vld [vmem:[%s1093_s1 + $0x18] sm:$0xff]   ;;  %v934_v11 = vld [vmem:[%s1093_s1 + $0x10] sm:$0xff]   ;;  %v938_v14 = vld [vmem:[%s1093_s1 + $0x28] sm:$0xff]   ;;  %s712_s21 = scalar_lea.vmem %s1007_s25, %s792_s4  ;;  %vm713_vm3 = vcmask 256000  }
  0x12   : >> { %858 = vmatpush3.bf16.msra.mxu0 %v931_v2  ;;  %859 = vmatprep.mubr.msk.bf16.mxu0 %vm960_vm0, %v959_v3  ;;  %v182_v5 = vld [vmem:[%s181_s5] sm:$0x7]  ;;  %v805_v12 = vld [vmem:[%s181_s5 + $0x4] sm:$0x7]  ;;  %v820_v15 = vld [vmem:[%s181_s5 + $0x8] sm:$0x7] }
  0x13   : >> { %864 = vmatpush3.bf16.msra.mxu1 %v932_v4  ;;  %865 = vmatprep.mubr.msk.bf16.mxu1 %vm960_vm0, %v959_v3  ;;  %v795_v7 = vcombine.low %v182_v5, %v182_v5  ;;  %v812_v16 = vcombine.low %v805_v12, %v805_v12  ;;  %v827_v17 = vcombine.low %v820_v15, %v820_v15  ;;  %v937_v20 = vld [vmem:[%s1093_s1 + $0x20] sm:$0xff]   ;;  %v940_v23 = vld [vmem:[%s1093_s1 + $0x38] sm:$0xff]   ;;  %v939_v29 = vld [vmem:[%s1093_s1 + $0x30] sm:$0xff]   ;;  %s179_s26 = sadd.s32 1, %s957_s26  }
  0x14   : >> { %869 = vmatprep.subr.bf16.mxu0 %v959_v3  ;;  %875 = vmatprep.subr.bf16.mxu1 %v959_v3  ;;  %v942_v31 = vld [vmem:[%s1093_s1 + $0x40] sm:$0xff]   ;;  %p176_p4 = scmp.ge.s32.totalorder %s179_s26, 3  }
  0x15   : >> { %v192_v8 = vshrl.u32 %v795_v7, 16  ;;  %v194_v9 = vshll.u32 %v795_v7, 16  ;;  %v300_v18 = vrot.slane %v795_v7, 1  ;;  %v417_v19 = vshll.u32 %v812_v16, 16 }
  0x16   : >> { %866 = vmatmul.mubr.msk.bf16.vlgmr.msra.gmra.mxu1 %vm204_vm1, %v182_v5  ;;  %v474_v21 = vrot.slane %v812_v16, 1  ;;  %v591_v22 = vshll.u32 %v827_v17, 16  ;;  %v415_v24 = vshrl.u32 %v812_v16, 16  ;;  %v589_v26 = vshrl.u32 %v827_v17, 16 }
  0x17   : >> { %876 = vmatpush3.bf16.msra.mxu1 %v935_v6  ;;  %877 = vmatprep.mubr.msk.bf16.mxu1 %vm960_vm0, %v959_v3  ;;  %v196_v10 = vrot.slane %v194_v9, 1  ;;  %v419_v25 = vrot.slane %v417_v19, 1  ;;  %v648_v32 = vrot.slane %v827_v17, 1 }
  0x18   : >> { %887 = vmatprep.subr.bf16.mxu1 %v959_v3  ;;  %v593_v27 = vrot.slane %v591_v22, 1 }
  0x19   : >> { %v197_v13 = vor.u32 %v196_v10, %v192_v8  ;;  %v420_v28 = vor.u32 %v419_v25, %v415_v24 }
  0x1a   : >> { %v594_v30 = vor.u32 %v593_v27, %v589_v26 }
  0x1b   : >> { %860 = vmatmul.mubr.msk.bf16.vlgmr.msra.gmra.mxu0 %vm204_vm1, %v197_v13 }
  0x1c   : >> { %870 = vmatpush3.bf16.msra.mxu0 %v934_v11  ;;  %871 = vmatprep.mubr.msk.bf16.mxu0 %vm960_vm0, %v959_v3 }
  0x1d   : >> { %881 = vmatprep.subr.bf16.mxu0 %v959_v3 }
  0x1e   : >> { %878 = vmatmul.mubr.msk.bf16.vlgmr.msra.gmra.mxu1 %vm204_vm1, %v805_v12 }
  0x1f   : >> { %888 = vmatpush3.bf16.msra.mxu1 %v938_v14  ;;  %889 = vmatprep.mubr.msk.bf16.mxu1 %vm960_vm0, %v959_v3 }
  0x20   : >> { %899 = vmatprep.subr.bf16.mxu1 %v959_v3 }
  0x23   : >> { %872 = vmatmul.mubr.msk.bf16.vlgmr.msra.gmra.mxu0 %vm204_vm1, %v300_v18 }
  0x24   : >> { %882 = vmatpush3.bf16.msra.mxu0 %v937_v20  ;;  %883 = vmatprep.mubr.msk.bf16.mxu0 %vm960_vm0, %v959_v3 }
  0x25   : >> { %893 = vmatprep.subr.bf16.mxu0 %v959_v3 }
  0x26   : >> { %890 = vmatmul.mubr.msk.bf16.vlgmr.msra.gmra.mxu1 %vm204_vm1, %v474_v21 }
  0x27   : >> { %900 = vmatpush3.bf16.msra.mxu1 %v940_v23  ;;  %901 = vmatprep.mubr.msk.bf16.mxu1 %vm960_vm0, %v959_v3 }
  0x2b   : >> { %884 = vmatmul.mubr.msk.bf16.vlgmr.msra.gmra.mxu0 %vm204_vm1, %v420_v28 }
  0x2c   : >> { %894 = vmatpush3.bf16.msra.mxu0 %v939_v29  ;;  %895 = vmatprep.mubr.msk.bf16.mxu0 %vm960_vm0, %v959_v3 }
  0x2d   : >> { %905 = vmatprep.subr.bf16.mxu0 %v959_v3 }
  0x2e   : >> { %902 = vmatmul.mubr.msk.bf16.vlgmr.msra.gmra.mxu1 %vm204_vm1, %v594_v30 }
  0x33   : >> { %896 = vmatmul.mubr.msk.bf16.vlgmr.msra.gmra.mxu0 %vm204_vm1, %v820_v15 }
  0x34   : >> { %906 = vmatpush3.bf16.msra.mxu0 %v942_v31  ;;  %907 = vmatprep.mubr.msk.bf16.mxu0 %vm960_vm0, %v959_v3 }
  0x3b   : >> { %908 = vmatmul.mubr.msk.bf16.vlgmr.msra.gmra.mxu0 %vm204_vm1, %v648_v32 }
  0xd6   : >> { %v291_v33 = vpop.f32.mrf.mxu1 }
  0xd8   : >> { %v867_v34 = vpop.f32.mrf.mxu1 }
  0xda   : >> { %v294_v35 = vpop.f32.mrf.mxu1 }
  0xdb   : >> { %v242_v37 = vpop.f32.mrf.mxu0 }
  0xdc   : >> { %v868_v36 = vpop.f32.mrf.mxu1  ;;  %v292_v50 = vadd.f32 %v291_v33, %v242_v37 }
  0xdd   : >> { %v861_v38 = vpop.f32.mrf.mxu0 }
  0xde   : >> { %v401_v39 = vpop.f32.mrf.mxu1 }
  0xdf   : >> { %v245_v40 = vpop.f32.mrf.mxu0 }
  0xe0   : >> { %v879_v41 = vpop.f32.mrf.mxu1 }
  0xe1   : >> { %v862_v42 = vpop.f32.mrf.mxu0 }
  0xe2   : >> { %v404_v43 = vpop.f32.mrf.mxu1 }
  0xe3   : >> { %v344_v44 = vpop.f32.mrf.mxu0 }
  0xe4   : >> { %v880_v45 = vpop.f32.mrf.mxu1  ;;  %v350_v53 = vadd.f32 %v344_v44, %v292_v50 }
  0xe5   : >> { %v873_v46 = vpop.f32.mrf.mxu0 }
  0xe6   : >> { %v518_v47 = vpop.f32.mrf.mxu1  ;;  %v407_v58 = vadd.f32 %v401_v39, %v350_v53 }
  0xe7   : >> { %v347_v48 = vpop.f32.mrf.mxu0 }
  0xe8   : >> { %v891_v49 = vpop.f32.mrf.mxu1 }
  0xe9   : >> { %v874_v51 = vpop.f32.mrf.mxu0 }
  0xea   : >> { %v521_v52 = vpop.f32.mrf.mxu1 }
  0xeb   : >> { %v464_v54 = vpop.f32.mrf.mxu0 }
  0xec   : >> { %v892_v55 = vpop.f32.mrf.mxu1  ;;  %v470_v61 = vadd.f32 %v464_v54, %v407_v58 }
  0xed   : >> { %v885_v56 = vpop.f32.mrf.mxu0 }
  0xee   : >> { %v638_v57 = vpop.f32.mrf.mxu1  ;;  %v524_v4 = vadd.f32 %v518_v47, %v470_v61 }
  0xef   : >> { %v467_v59 = vpop.f32.mrf.mxu0 }
  0xf0   : >> { %v903_v60 = vpop.f32.mrf.mxu1 }
  0xf1   : >> { %v886_v62 = vpop.f32.mrf.mxu0 }
  0xf2   : >> { %v641_v63 = vpop.f32.mrf.mxu1 }
  0xf3   : >> { %v575_v2 = vpop.f32.mrf.mxu0 }
  0xf4   : >> { %v904_v3 = vpop.f32.mrf.mxu1  ;;  %v581_v6 = vadd.f32 %v575_v2, %v524_v4 }
  0xf5   : >> { %v897_v5 = vpop.f32.mrf.mxu0 }
  0xf6   : >> { %v644_v9 = vadd.f32 %v638_v57, %v581_v6 }
  0xf7   : >> { %v578_v7 = vpop.f32.mrf.mxu0 }
  0xf9   : >> { %v898_v8 = vpop.f32.mrf.mxu0 }
  0xfb   : >> { %v692_v10 = vpop.f32.mrf.mxu0 }
  0xfc   : >> { %v698_v11 = vadd.f32 %v692_v10, %v644_v9 }
  0xfd   : >> { %v909_v12 = vpop.f32.mrf.mxu0 }
  0xfe   : >> { %v703_v13 = vadd.f32 %v992_v0, %v698_v11 }
  0xff   : >> { %v695_v14 = vpop.f32.mrf.mxu0  ;;  %178 = sbr.rel (!%p176_p4) target bundleno = 16 (0x10), region = 81 }
 0x100   : >> { %vm704_vm2 = vcmp.gt.f32.partialorder %v703_v13, 0.0  ;;  %v709_v15 = vmul.f32 %v997_v1, %v703_v13 }
 0x101   : >> { %v910_v16 = vpop.f32.mrf.mxu0 }
 0x102   : >> { %v710_v17 = vsel %vm704_vm2, %v703_v13, %v709_v15 }
 0x103   : >> { %714 = vst.msk [vmem:[%s712_s21] sm:$0x7] %vm713_vm3, %v710_v17 }
 0x104 PF: > { %s13_s12 = sadd.s32 1, %s953_s12  }
 0x105   : > { %p10_p5 = scmp.ge.s32.totalorder %s13_s12, 4  }
 0x107   :  { %12 = sbr.rel (!%p10_p5) target bundleno = 1 (0x1), region = 92 }

// kernel: pnet_forward.5
= control target key start
LH: loop header
LB: loop body
LE: loop exit
PB: predicated region body
PF: predicated region fallthrough
CT: control target
= control target key end

     0   :  { %s986_s12 = smov 0   ;;  %s1097_s0 = inlined_call_operand.vmem [shape: bf16[2,7,7,16], index: 0, kind: input, shape index: {}]   ;;  %s1098_s1 = inlined_call_operand.vmem [shape: bf16[9,16,16], index: 1, kind: input, shape index: {}]   ;;  %s1099_s2 = inlined_call_operand.vmem [shape: f32[2,16], index: 2, kind: input, shape index: {}]   ;;  %s1100_s3 = inlined_call_operand.vmem [shape: bf16[2,5,5,16], index: 3, kind: output, shape index: {}]  }
   0x1 LB: > { %s790_s13 = sadd.s32 4294967295, %s958_s12   ;;  %p794_p0 = scmp.ge.s32.totalorder %s958_s12, 1  ;;  %s958_s12 = sphi %s986_s12, %s13_s12  }
   0x2   : > { %p137_p1 = scmp.lt.s32.totalorder %s958_s12, 3 }
   0x4   : > { %p138_p2 = pnand %p794_p0, %p137_p1 }
   0x5   : > { %p161_p3 = scmp.lt.s32.totalorder (!%p138_p2), %s790_s13, 1  ;;  %s1014_s26 = smov (!%p138_p2), 0  }
   0x6   : > { %141 = sbr.rel (%p138_p2) target bundleno = 263 (0x107), region = 32 }
   0xb   : > { %v997_v0 = vld [vmem:[%s1099_s2] ss:$0 sm:$0xff]  ;;  %v1002_v1 = vld [vmem:[%s1099_s2 + $0x1] ss:$0 sm:$0xff]  ;;  %s1102_s13 = smov (!%p161_p3, %s790_s13), 1 }
   0xc   : > { %s916_s18 = smul.u32 28, %s1102_s13 }
   0xd   : > { %s917_s19 = smul.u32 20, %s1102_s13 }
   0xe   : > { %s1007_s22 = scalar_lea.vmem %s1097_s0, %s916_s18 }
   0xf   : > { %s1012_s25 = scalar_lea.vmem %s1100_s3, %s917_s19 }
  0x10 LB: >> { %v936_v2 = vld [vmem:[%s1098_s1 + $0x8] sm:$0xff]   ;;  %v964_v3 = vmov 0.0   ;;  %v937_v4 = vld [vmem:[%s1098_s1] sm:$0xff]   ;;  %vm965_vm0 = vmmov 0   ;;  %s797_s4 = sshll.u32 %s962_s26, 2  ;;  %vm204_vm1 = vcmask 130048   ;;  %s962_s26 = sphi %s1014_s26, %s179_s26  }
  0x11   : >> { %862 = vmatprep.subr.bf16.mxu0 %v964_v3  ;;  %868 = vmatprep.subr.bf16.mxu1 %v964_v3  ;;  %s181_s5 = scalar_lea.vmem %s1007_s22, %s797_s4  ;;  %v940_v6 = vld [vmem:[%s1098_s1 + $0x18] sm:$0xff]   ;;  %v939_v11 = vld [vmem:[%s1098_s1 + $0x10] sm:$0xff]   ;;  %v943_v14 = vld [vmem:[%s1098_s1 + $0x28] sm:$0xff]   ;;  %s713_s21 = scalar_lea.vmem %s1012_s25, %s797_s4  ;;  %vm714_vm2 = vcmask 124928   ;;  %vm715_vm3 = vsmask.f32 2304 }
  0x12   : >> { %863 = vmatpush3.bf16.msra.mxu0 %v936_v2  ;;  %864 = vmatprep.mubr.msk.bf16.mxu0 %vm965_vm0, %v964_v3  ;;  %v182_v5 = vld [vmem:[%s181_s5] sm:$0xf]  ;;  %v810_v12 = vld [vmem:[%s181_s5 + $0x4] sm:$0xf]  ;;  %v825_v15 = vld [vmem:[%s181_s5 + $0x8] sm:$0xf] }
  0x13   : >> { %869 = vmatpush3.bf16.msra.mxu1 %v937_v4  ;;  %870 = vmatprep.mubr.msk.bf16.mxu1 %vm965_vm0, %v964_v3  ;;  %v800_v7 = vcombine.low %v182_v5, %v182_v5  ;;  %v817_v16 = vcombine.low %v810_v12, %v810_v12  ;;  %v832_v17 = vcombine.low %v825_v15, %v825_v15  ;;  %v942_v20 = vld [vmem:[%s1098_s1 + $0x20] sm:$0xff]   ;;  %v945_v23 = vld [vmem:[%s1098_s1 + $0x38] sm:$0xff]   ;;  %v944_v29 = vld [vmem:[%s1098_s1 + $0x30] sm:$0xff]   ;;  %s179_s26 = sadd.s32 1, %s962_s26  }
  0x14   : >> { %874 = vmatprep.subr.bf16.mxu0 %v964_v3  ;;  %880 = vmatprep.subr.bf16.mxu1 %v964_v3  ;;  %v947_v31 = vld [vmem:[%s1098_s1 + $0x40] sm:$0xff]   ;;  %vm716_vm5 = vmand %vm714_vm2, %vm715_vm3  ;;  %p176_p4 = scmp.ge.s32.totalorder %s179_s26, 5  }
  0x15   : >> { %v192_v8 = vshrl.u32 %v800_v7, 16  ;;  %v194_v9 = vshll.u32 %v800_v7, 16  ;;  %v300_v18 = vrot.slane %v800_v7, 1  ;;  %v417_v19 = vshll.u32 %v817_v16, 16 }
  0x16   : >> { %871 = vmatmul.mubr.msk.bf16.vlgmr.msra.gmra.mxu1 %vm204_vm1, %v182_v5  ;;  %v474_v21 = vrot.slane %v817_v16, 1  ;;  %v591_v22 = vshll.u32 %v832_v17, 16  ;;  %v415_v24 = vshrl.u32 %v817_v16, 16  ;;  %v589_v26 = vshrl.u32 %v832_v17, 16 }
  0x17   : >> { %881 = vmatpush3.bf16.msra.mxu1 %v940_v6  ;;  %882 = vmatprep.mubr.msk.bf16.mxu1 %vm965_vm0, %v964_v3  ;;  %v196_v10 = vrot.slane %v194_v9, 1  ;;  %v419_v25 = vrot.slane %v417_v19, 1  ;;  %v648_v32 = vrot.slane %v832_v17, 1 }
  0x18   : >> { %892 = vmatprep.subr.bf16.mxu1 %v964_v3  ;;  %v593_v27 = vrot.slane %v591_v22, 1 }
  0x19   : >> { %v197_v13 = vor.u32 %v196_v10, %v192_v8  ;;  %v420_v28 = vor.u32 %v419_v25, %v415_v24 }
  0x1a   : >> { %v594_v30 = vor.u32 %v593_v27, %v589_v26 }
  0x1b   : >> { %865 = vmatmul.mubr.msk.bf16.vlgmr.msra.gmra.mxu0 %vm204_vm1, %v197_v13 }
  0x1c   : >> { %875 = vmatpush3.bf16.msra.mxu0 %v939_v11  ;;  %876 = vmatprep.mubr.msk.bf16.mxu0 %vm965_vm0, %v964_v3 }
  0x1d   : >> { %886 = vmatprep.subr.bf16.mxu0 %v964_v3 }
  0x1e   : >> { %883 = vmatmul.mubr.msk.bf16.vlgmr.msra.gmra.mxu1 %vm204_vm1, %v810_v12 }
  0x1f   : >> { %893 = vmatpush3.bf16.msra.mxu1 %v943_v14  ;;  %894 = vmatprep.mubr.msk.bf16.mxu1 %vm965_vm0, %v964_v3 }
  0x20   : >> { %904 = vmatprep.subr.bf16.mxu1 %v964_v3 }
  0x23   : >> { %877 = vmatmul.mubr.msk.bf16.vlgmr.msra.gmra.mxu0 %vm204_vm1, %v300_v18  ;;  %v717_v18 = vld [vmem:[%s713_s21] sm:$0x7] }
  0x24   : >> { %887 = vmatpush3.bf16.msra.mxu0 %v942_v20  ;;  %888 = vmatprep.mubr.msk.bf16.mxu0 %vm965_vm0, %v964_v3 }
  0x25   : >> { %898 = vmatprep.subr.bf16.mxu0 %v964_v3 }
  0x26   : >> { %895 = vmatmul.mubr.msk.bf16.vlgmr.msra.gmra.mxu1 %vm204_vm1, %v474_v21 }
  0x27   : >> { %905 = vmatpush3.bf16.msra.mxu1 %v945_v23  ;;  %906 = vmatprep.mubr.msk.bf16.mxu1 %vm965_vm0, %v964_v3 }
  0x2b   : >> { %889 = vmatmul.mubr.msk.bf16.vlgmr.msra.gmra.mxu0 %vm204_vm1, %v420_v28 }
  0x2c   : >> { %899 = vmatpush3.bf16.msra.mxu0 %v944_v29  ;;  %900 = vmatprep.mubr.msk.bf16.mxu0 %vm965_vm0, %v964_v3 }
  0x2d   : >> { %910 = vmatprep.subr.bf16.mxu0 %v964_v3 }
  0x2e   : >> { %907 = vmatmul.mubr.msk.bf16.vlgmr.msra.gmra.mxu1 %vm204_vm1, %v594_v30 }
  0x33   : >> { %901 = vmatmul.mubr.msk.bf16.vlgmr.msra.gmra.mxu0 %vm204_vm1, %v825_v15 }
  0x34   : >> { %911 = vmatpush3.bf16.msra.mxu0 %v947_v31  ;;  %912 = vmatprep.mubr.msk.bf16.mxu0 %vm965_vm0, %v964_v3 }
  0x3b   : >> { %913 = vmatmul.mubr.msk.bf16.vlgmr.msra.gmra.mxu0 %vm204_vm1, %v648_v32 }
  0xd6   : >> { %v291_v33 = vpop.f32.mrf.mxu1 }
  0xd8   : >> { %v872_v34 = vpop.f32.mrf.mxu1 }
  0xda   : >> { %v294_v35 = vpop.f32.mrf.mxu1 }
  0xdb   : >> { %v242_v37 = vpop.f32.mrf.mxu0 }
  0xdc   : >> { %v873_v36 = vpop.f32.mrf.mxu1  ;;  %v292_v50 = vadd.f32 %v291_v33, %v242_v37 }
  0xdd   : >> { %v866_v38 = vpop.f32.mrf.mxu0 }
  0xde   : >> { %v401_v39 = vpop.f32.mrf.mxu1 }
  0xdf   : >> { %v245_v40 = vpop.f32.mrf.mxu0 }
  0xe0   : >> { %v884_v41 = vpop.f32.mrf.mxu1 }
  0xe1   : >> { %v867_v42 = vpop.f32.mrf.mxu0 }
  0xe2   : >> { %v404_v43 = vpop.f32.mrf.mxu1 }
  0xe3   : >> { %v344_v44 = vpop.f32.mrf.mxu0 }
  0xe4   : >> { %v885_v45 = vpop.f32.mrf.mxu1  ;;  %v350_v53 = vadd.f32 %v344_v44, %v292_v50 }
  0xe5   : >> { %v878_v46 = vpop.f32.mrf.mxu0 }
  0xe6   : >> { %v518_v47 = vpop.f32.mrf.mxu1  ;;  %v407_v58 = vadd.f32 %v401_v39, %v350_v53 }
  0xe7   : >> { %v347_v48 = vpop.f32.mrf.mxu0 }
  0xe8   : >> { %v896_v49 = vpop.f32.mrf.mxu1 }
  0xe9   : >> { %v879_v51 = vpop.f32.mrf.mxu0 }
  0xea   : >> { %v521_v52 = vpop.f32.mrf.mxu1 }
  0xeb   : >> { %v464_v54 = vpop.f32.mrf.mxu0 }
  0xec   : >> { %v897_v55 = vpop.f32.mrf.mxu1  ;;  %v470_v61 = vadd.f32 %v464_v54, %v407_v58 }
  0xed   : >> { %v890_v56 = vpop.f32.mrf.mxu0 }
  0xee   : >> { %v638_v57 = vpop.f32.mrf.mxu1  ;;  %v524_v4 = vadd.f32 %v518_v47, %v470_v61 }
  0xef   : >> { %v467_v59 = vpop.f32.mrf.mxu0 }
  0xf0   : >> { %v908_v60 = vpop.f32.mrf.mxu1 }
  0xf1   : >> { %v891_v62 = vpop.f32.mrf.mxu0 }
  0xf2   : >> { %v641_v63 = vpop.f32.mrf.mxu1 }
  0xf3   : >> { %v575_v2 = vpop.f32.mrf.mxu0 }
  0xf4   : >> { %v909_v3 = vpop.f32.mrf.mxu1  ;;  %v581_v6 = vadd.f32 %v575_v2, %v524_v4 }
  0xf5   : >> { %v902_v5 = vpop.f32.mrf.mxu0 }
  0xf6   : >> { %v644_v9 = vadd.f32 %v638_v57, %v581_v6 }
  0xf7   : >> { %v578_v7 = vpop.f32.mrf.mxu0 }
  0xf9   : >> { %v903_v8 = vpop.f32.mrf.mxu0 }
  0xfb   : >> { %v692_v10 = vpop.f32.mrf.mxu0 }
  0xfc   : >> { %v698_v11 = vadd.f32 %v692_v10, %v644_v9 }
  0xfd   : >> { %v914_v12 = vpop.f32.mrf.mxu0 }
  0xfe   : >> { %v703_v13 = vadd.f32 %v997_v0, %v698_v11 }
  0xff   : >> { %v695_v14 = vpop.f32.mrf.mxu0 }
 0x100   : >> { %vm704_vm4 = vcmp.gt.f32.partialorder %v703_v13, 0.0  ;;  %v709_v15 = vmul.f32 %v1002_v1, %v703_v13 }
 0x101   : >> { %v915_v16 = vpop.f32.mrf.mxu0 }
 0x102   : >> { %v710_v17 = vsel %vm704_vm4, %v703_v13, %v709_v15  ;;  %178 = sbr.rel (!%p176_p4) target bundleno = 16 (0x10), region = 81 }
 0x103   : >> { %v711_v19 = vpack.c.bf16 %v710_v17, %v710_v17 }
 0x105   : >> { %v718_v20 = vsel %vm716_vm5, %v711_v19, %v717_v18 }
 0x106   : >> { %719 = vst [vmem:[%s713_s21] sm:$0x7] %v718_v20 }
 0x107 PF: > { %s13_s12 = sadd.s32 1, %s958_s12  }
 0x108   : > { %p10_p5 = scmp.ge.s32.totalorder %s13_s12, 4  }
 0x10a   :  { %12 = sbr.rel (!%p10_p5) target bundleno = 1 (0x1), region = 92 }

// kernel: pnet_forward.7
= control target key start
LH: loop header
LB: loop body
LE: loop exit
PB: predicated region body
PF: predicated region fallthrough
CT: control target
= control target key end

     0   :  { %s801_s12 = smov 0   ;;  %s803_s13 = smov 0   ;;  %s899_s0 = inlined_call_operand.vmem [shape: f32[18,32], index: 0, kind: input, shape index: {}]   ;;  %s900_s1 = inlined_call_operand.vmem [shape: f32[32,6], index: 1, kind: input, shape index: {}]   ;;  %s901_s2 = inlined_call_operand.vmem [shape: f32[1,6], index: 2, kind: input, shape index: {}]   ;;  %s902_s3 = inlined_call_operand.vmem [shape: f32[18,6], index: 3, kind: output, shape index: {}]  }
   0x1   :  { %s805_s14 = smov 0  }
   0x2 LB: > { %s814_s15 = sadd.s32 4294967295, %s745_s14   ;;  %s816_s16 = sadd.s32 1, %s745_s14   ;;  %s745_s14 = sphi %s805_s14, %s906_s14   ;;  %s741_s13 = sphi %s803_s13, %s905_s13   ;;  %s737_s12 = sphi %s801_s12, %s904_s12  }
   0x3   : > { %s85_s17 = ssub.s32 %s745_s14, %s816_s16  ;;  %s88_s18 = sadd.s32 1, %s741_s13 }
   0x4   : > { %p86_p0 = scmp.eq.s32.totalorder %s85_s17, 0  ;;  %p98_p1 = scmp.ne.s32.totalorder %s741_s13, %s737_s12 }
   0x5   : > { %p99_p2 = scmp.eq.s32.totalorder %s814_s15, 1  ;;  %p549_p3 = scmp.ge.s32.totalorder %s745_s14, 1 }
   0x6   : > { %s824_s19 = scalar_select %p86_p0, %s741_s13, %s88_s18  }
   0x7   : > { %p826_p4 = por %p99_p2, %p98_p1  ;;  %p146_p5 = scmp.lt.s32.totalorder %s745_s14, 3 }
   0x9   : > { %p147_p6 = pnand %p549_p3, %p146_p5 }
   0xa   : > { %s837_s25 = sshll.u32 (!%p147_p6), %s814_s15, 1  ;;  %s779_s10 = smov (!%p147_p6), 127  }
   0xb   : > { %150 = sbr.rel (%p147_p6) target bundleno = 532 (0x214), region = 32  ;;  %p178_p7 = scmp.lt.s32.totalorder (!%p147_p6), %s837_s25, 2 }
   0xc   : > { %s780_s11 = smov (!%p147_p6), 1   ;;  %s170_s14 = sand.u32 (!%p147_p6), 1, %s737_s12  }
   0xd   : > { %s550_s17 = sshll.u32 (!%p147_p6), %s170_s14, 4 }
   0xe   : > { %s854_s18 = scalar_lea.vmem (!%p147_p6), [#allocation2], %s550_s17  }
  0x10   : > { %v197_v0 = vld [vmem:[%s900_s1 + $0x18] sm:$0xff]  ;;  %v196_v1 = vld [vmem:[%s900_s1 + $0x10] sm:$0xff]  ;;  %v195_v2 = vld [vmem:[%s900_s1 + $0x8] sm:$0xff]  ;;  %s179_s28 = scalar_select %p178_p7, %s837_s25, 2  ;;  %vm205_vm0 = vcmask 261120   ;;  %vm317_vm1 = vcmask 7168  }
  0x11   : > { %582 = vmatprep.subr.mxu0 %v197_v0  ;;  %v194_v3 = vld [vmem:[%s900_s1] sm:$0xff]  ;;  %vm320_vm2 = vcmask 15360   ;;  %vm323_vm3 = vcmask 48128   ;;  %s334_s12 = ssub.s32 (%p826_p4), 3, %s837_s25  ;;  %s573_s21 = sshll.u32 (%p826_p4), %s814_s15, 4 }
  0x12   : > { %583 = vmatpush3.msra.mxu0 %v197_v0  ;;  %s552_s4 = sshll.u32 %s179_s28, 3  ;;  %v553_v7 = vld [vmem:[%s901_s2] ss:$0 sm:$0xff]  ;;  %p335_p8 = scmp.lt.s32.totalorder (%p826_p4), %s334_s12, 2 }
  0x13   : > { %584 = vmatprep.subr.mxu0 %v196_v1  ;;  %s181_s7 = scalar_lea.vmem %s899_s0, %s552_s4  ;;  %s865_s24 = scalar_lea.vmem (%p826_p4), %s902_s3, %s573_s21  }
  0x14   : > { %585 = vmatpush3.msra.mxu0 %v196_v1  ;;  %v192_v4 = vld [vmem:[%s181_s7] sm:$0xff]  ;;  %v193_v5 = vld [vmem:[%s181_s7 + $0x8] sm:$0xff] }
  0x15   : > { %586 = vmatprep.subr.mxu0 %v195_v2  ;;  %590 = vmatprep.mubr.msk.f32.mxu0 %vm205_vm0, %v192_v4 }
  0x16   : > { %587 = vmatpush3.msra.mxu0 %v195_v2 }
  0x17   : > { %588 = vmatprep.subr.mxu0 %v194_v3 }
  0x18   : > { %589 = vmatpush3.msra.mxu0 %v194_v3 }
  0x19   : > { %591 = vmatmul.mubr.msk.f32.vlgmr.msra.gmra.mxu0 %vm205_vm0, %v193_v5 }
  0xd9   : > { %v592_v6 = vpop.f32.mrf.mxu0 }
  0xda   : > { %v284_v10 = vadd.f32 %v592_v6, %v553_v7 }
  0xdb   : > { %v278_v8 = vpop.f32.mrf.mxu0 }
  0xdc   : > { %v279_v9 = vadd.f32 %v553_v7, %v278_v8 }
  0xde   : > { %289 = vrot.lane.b32.xlu0 %v279_v9, %s779_s10 }
  0xe2   : > { %291 = vrot.lane.b32.xlu0 %v284_v10, %s779_s10 }
 0x150   : > { %v290_v11 = vpop.permute.xlu0 %289 }
 0x151   : > { %v295_v12 = vsub.f32 %v279_v9, %v290_v11 }
 0x153   : > { %v297_v13 = vmul.f32 1.442695, %v295_v12 }
 0x154   : > { %v292_v14 = vpop.permute.xlu0 %291 }
 0x155   : > { %683 = vpow2.f32 %v297_v13  ;;  %v296_v15 = vsub.f32 %v284_v10, %v292_v14 }
 0x157   : > { %v299_v16 = vmul.f32 1.442695, %v296_v15 }
 0x159   : > { %685 = vpow2.f32 %v299_v16 }
 0x162   : > { %v684_v17 = vpop.eup %683 }
 0x163   : > { %v301_v18 = vadd.f32 1.0, %v684_v17 }
 0x165   : > { %687 = vrcp.f32 %v301_v18 }
 0x166   : > { %v686_v19 = vpop.eup %685 }
 0x167   : > { %v302_v20 = vadd.f32 1.0, %v686_v19 }
 0x169   : > { %689 = vrcp.f32 %v302_v20 }
 0x172   : > { %v688_v21 = vpop.eup %687 }
 0x173   : > { %311 = vrot.lane.b32.xlu1 %v688_v21, %s780_s11  ;;  %v307_v23 = vsub.f32 1.0, %v688_v21 }
 0x176   : > { %v690_v22 = vpop.eup %689 }
 0x177   : > { %313 = vrot.lane.b32.xlu1 %v690_v22, %s780_s11  ;;  %v308_v27 = vsub.f32 1.0, %v690_v22 }
 0x1e5   : > { %v312_v24 = vpop.permute.xlu1 %311 }
 0x1e6   : > { %v318_v25 = vsel %vm317_vm1, %v307_v23, %v312_v24 }
 0x1e7   : > { %v321_v26 = vsel %vm320_vm2, %v318_v25, %v279_v9 }
 0x1e8   : > { %324 = vst.msk [vmem:[%s854_s18] sm:$0xff] %vm323_vm3, %v321_v26  ;;  %332 = sbr.rel (!%p826_p4) target bundleno = 532 (0x214), region = 36 }
 0x1e9   : > { %v314_v28 = vpop.permute.xlu1 %313 }
 0x1ea   : > { %v319_v29 = vsel %vm317_vm1, %v308_v27, %v314_v28 }
 0x1eb   : > { %v322_v30 = vsel %vm320_vm2, %v319_v29, %v284_v10 }
 0x1ec   : > { %325 = vst.msk [vmem:[%s854_s18 + $0x8] sm:$0xff] %vm323_vm3, %v322_v30 }
 0x1ed   : > { %s908_s12 = smov (!%p335_p8, %s334_s12), 2 }
 0x1ee   : > { %s558_s26 = sshll.u32 %s908_s12, 7 }
 0x1ef   : > { %p561_p9 = scmp.eq.s32.totalorder %s558_s26, 0 }
 0x1f0   : > { %s871_s27 = sshrl.u32 (!%p561_p9), %s908_s12, 1 }
 0x1f1   : > { %343 = sbr.rel (%p561_p9) target bundleno = 532 (0x214), region = 40  ;;  %p562_p10 = scmp.le.s32.totalorder (!%p561_p9), %s871_s27, 0 }
 0x1f6   : > { %502 = sbr.rel (%p562_p10) target bundleno = 515 (0x203), region = 116  ;;  %s747_s15 = smov (!%p562_p10), %s865_s24  }
 0x1f7   : > { %s751_s20 = smov (!%p562_p10), %s854_s18   ;;  %s755_s25 = smov (!%p562_p10), 0  }
 0x1f8   : > { %s759_s28 = smov (!%p562_p10), 0  }
 0x1fb LB: >> { %v408_v31 = vld [vmem:[%s753_s20] sm:$0xff]  ;;  %v410_v32 = vld [vmem:[%s753_s20 + $0x8] sm:$0xff]  ;;  %s412_s29 = sadd.s32 1, %s757_s25  ;;  %s402_s28 = sadd.s32 1, %s761_s28   ;;  %s761_s28 = sphi %s759_s28, %s402_s28   ;;  %s757_s25 = sphi %s755_s25, %s756_s25   ;;  %s753_s20 = sphi %s751_s20, %s417_s20   ;;  %s749_s15 = sphi %s747_s15, %s418_s15  }
 0x1fc   : >> { %409 = vst [vmem:[%s749_s15] sm:$0xff] %v408_v31  ;;  %411 = vst [vmem:[%s749_s15 + $0x8] sm:$0xff] %v410_v32  ;;  %p413_p11 = scmp.ge.s32.totalorder %s412_s29, %s871_s27  ;;  %p401_p12 = scmp.ge.s32.totalorder %s402_s28, %s871_s27 }
 0x1fe   : >> { %s910_s29 = smov (%p413_p11, %s412_s29), 0  ;;  %404 = sbr.rel (!%p401_p12) target bundleno = 507 (0x1fb), region = 122 }
 0x1ff   : >> { %s563_s30 = sshll.u32 %s910_s29, 4  ;;  %s756_s25 = smov %s910_s29  }
 0x200   : >> { %s417_s20 = scalar_lea.vmem %s854_s18, %s563_s30 [#allocation2]   ;;  %s418_s15 = scalar_lea.vmem %s865_s24, %s563_s30  }
 0x203 PF: > { %s881_s4 = sand.u32 1, %s908_s12   ;;  %s574_s5 = sshll.u32 %s871_s27, 4 }
 0x204   : > { %s423_s6 = scalar_lea.vmem %s854_s18, %s574_s5 [#allocation2]   ;;  %s425_s7 = scalar_lea.vmem %s865_s24, %s574_s5  }
 0x205   : > { %p568_p13 = scmp.le.s32.totalorder %s881_s4, 0 }
 0x206   : > { %s763_s8 = smov (!%p568_p13), %s425_s7   ;;  %s767_s9 = smov (!%p568_p13), %s423_s6  }
 0x207   : > { %516 = sbr.rel (%p568_p13) target bundleno = 532 (0x214), region = 127  ;;  %s771_s10 = smov (!%p568_p13), 0  }
 0x208   : > { %s775_s11 = smov (!%p568_p13), 0  }
 0x20c LB: >> { %v435_v33 = vld [vmem:[%s769_s9] sm:$0xff]  ;;  %s437_s14 = sadd.s32 1, %s773_s10  ;;  %s429_s11 = sadd.s32 1, %s777_s11   ;;  %s777_s11 = sphi %s775_s11, %s429_s11   ;;  %s773_s10 = sphi %s771_s10, %s772_s10   ;;  %s769_s9 = sphi %s767_s9, %s442_s9   ;;  %s765_s8 = sphi %s763_s8, %s443_s8  }
 0x20d   : >> { %436 = vst [vmem:[%s765_s8] sm:$0xff] %v435_v33  ;;  %p438_p0 = scmp.ge.s32.totalorder %s437_s14, %s881_s4  ;;  %p428_p1 = scmp.ge.s32.totalorder %s429_s11, %s881_s4 }
 0x20f   : >> { %s912_s14 = smov (%p438_p0, %s437_s14), 0  ;;  %431 = sbr.rel (!%p428_p1) target bundleno = 524 (0x20c), region = 133 }
 0x210   : >> { %s569_s17 = sshll.u32 %s912_s14, 3  ;;  %s772_s10 = smov %s912_s14  }
 0x211   : >> { %s442_s9 = scalar_lea.vmem %s423_s6, %s569_s17 [#allocation2]   ;;  %s443_s8 = scalar_lea.vmem %s425_s7, %s569_s17  }
 0x214 PF: > { %p10_p2 = scmp.ge.s32.totalorder %s816_s16, 4   ;;  %s904_s12 = smov %s741_s13 }
 0x215   : > { %s905_s13 = smov %s824_s19  ;;  %s906_s14 = smov %s816_s16 }
 0x216   :  { %12 = sbr.rel (!%p10_p2) target bundleno = 2 (0x2), region = 144 }

// kernel: pnet_forward.4
= control target key start
LH: loop header
LB: loop body
LE: loop exit
PB: predicated region body
PF: predicated region fallthrough
CT: control target
= control target key end

     0   :  { %s2588_s15 = smov 0   ;;  %s2908_s0 = inlined_call_operand.vmem [shape: bf16[2,16,8,8], index: 0, kind: input, shape index: {}]   ;;  %s2909_s1 = inlined_call_operand.vmem [shape: bf16[2,16,8,8], index: 1, kind: input, shape index: {}]   ;;  %s2910_s2 = inlined_call_operand.vmem [shape: bf16[9,8,16], index: 2, kind: input, shape index: {}]   ;;  %s2911_s3 = inlined_call_operand.vmem [shape: f32[2,16], index: 3, kind: input, shape index: {}]   ;;  %s2912_s4 = inlined_call_operand.vmem [shape: bf16[2,7,7,16], index: 4, kind: output, shape index: {}]  }
   0x1 LB: > { %s2122_s16 = sadd.s32 4294967295, %s2555_s15   ;;  %p2126_p0 = scmp.ge.s32.totalorder %s2555_s15, 1  ;;  %s2555_s15 = sphi %s2588_s15, %s14_s15  }
   0x2   : > { %p172_p1 = scmp.lt.s32.totalorder %s2555_s15, 3 }
   0x4   : > { %p173_p2 = pnand %p2126_p0, %p172_p1 }
   0x5   : > { %p203_p3 = scmp.lt.s32.totalorder (!%p173_p2), %s2122_s16, 1  ;;  %s2621_s6 = smov (!%p173_p2), 0  }
   0x6   : > { %176 = sbr.rel (%p173_p2) target bundleno = 366 (0x16e), region = 36 }
   0xb   : > { %v2599_v0 = vld [vmem:[%s2911_s3] ss:$0 sm:$0xff]  ;;  %v2604_v1 = vld [vmem:[%s2911_s3 + $0x1] ss:$0 sm:$0xff]  ;;  %s2914_s16 = smov (!%p203_p3, %s2122_s16), 1 }
   0xc   : > { %s2218_s21 = sshll.u32 %s2914_s16, 6  ;;  %s2514_s22 = smul.u32 28, %s2914_s16 }
   0xd   : > { %s2609_s25 = scalar_lea.vmem %s2908_s0, %s2218_s21  ;;  %s2614_s28 = scalar_lea.vmem %s2909_s1, %s2218_s21 }
   0xe   : > { %s2619_s5 = scalar_lea.vmem %s2912_s4, %s2514_s22 }
   0xf LB: >> { %v2135_v2 = vld [vmem:[%s2910_s2 + $0x4] sm:$0xf]  ;;  %vm246_vm0 = vcmask 1043456   ;;  %v237_v3 = vld [vmem:[%s2910_s2] sm:$0xf]  ;;  %v2561_v4 = vmov 0.0   ;;  %s2559_s6 = sphi %s2621_s6, %s226_s6  }
  0x10   : >> { %2298 = vmatprep.subr.bf16.mxu0 %v2561_v4  ;;  %2304 = vmatprep.subr.bf16.mxu1 %v2561_v4  ;;  %v2635_v5 = vsel %vm246_vm0, %v2135_v2, 0  ;;  %v2638_v6 = vsel %vm246_vm0, %v237_v3, 0  ;;  %v2136_v7 = vld [vmem:[%s2910_s2 + $0x8] sm:$0xf]  ;;  %s2220_s13 = sshll.u32 %s2559_s6, 3  ;;  %vm242_vm1 = vcmask 64512  }
  0x11   : >> { %2299 = vmatpush3.bf16.msra.mxu0 %v2635_v5  ;;  %2305 = vmatpush3.bf16.msra.mxu1 %v2638_v6  ;;  %vm2562_vm2 = vmmov 0   ;;  %s2651_s14 = scalar_lea.vmem %s2614_s28, %s2220_s13  ;;  %v2654_v8 = vsel %vm246_vm0, %v2136_v7, 0  ;;  %s2658_s16 = scalar_lea.vmem %s2609_s25, %s2220_s13  ;;  %v2151_v20 = vld [vmem:[%s2910_s2 + $0xc] sm:$0xf]  ;;  %v2152_v21 = vld [vmem:[%s2910_s2 + $0x10] sm:$0xf] }
  0x12   : >> { %2300 = vmatprep.mubr.msk.bf16.mxu0 %vm2562_vm2, %v2561_v4  ;;  %2306 = vmatprep.mubr.msk.bf16.mxu1 %vm2562_vm2, %v2561_v4  ;;  %v236_v9 = vld [vmem:[%s2651_s14] sm:$0xf]  ;;  %v2147_v23 = vld [vmem:[%s2658_s16 + $0x4] sm:$0xf]  ;;  %v2691_v24 = vsel %vm246_vm0, %v2151_v20, 0  ;;  %v2694_v25 = vsel %vm246_vm0, %v2152_v21, 0 }
  0x13   : >> { %2310 = vmatprep.subr.bf16.mxu0 %v2561_v4  ;;  %2316 = vmatprep.subr.bf16.mxu1 %v2561_v4  ;;  %v233_v10 = vld [vmem:[%s2658_s16] sm:$0xf]  ;;  %v2143_v11 = vcombine.low %v236_v9, %v236_v9  ;;  %v2156_v26 = vcombine.low %v2147_v23, %v2147_v23  ;;  %v2153_v27 = vld [vmem:[%s2910_s2 + $0x14] sm:$0xf]  ;;  %v2150_v29 = vld [vmem:[%s2651_s14 + $0x4] sm:$0xf] }
  0x14   : >> { %2301 = vmatmul.mubr.msk.bf16.vlgmr.msra.gmra.mxu0 %vm242_vm1, %v236_v9  ;;  %2307 = vmatmul.mubr.msk.bf16.vlgmr.msra.gmra.mxu1 %vm242_vm1, %v233_v10  ;;  %v2139_v12 = vcombine.low %v233_v10, %v233_v10  ;;  %v2711_v30 = vsel %vm246_vm0, %v2153_v27, 0  ;;  %v2160_v33 = vcombine.low %v2150_v29, %v2150_v29  ;;  %v2168_v38 = vld [vmem:[%s2910_s2 + $0x18] sm:$0xf]  ;;  %v2169_v39 = vld [vmem:[%s2910_s2 + $0x1c] sm:$0xf]  ;;  %s2132_s29 = sshll.u32 %s2559_s6, 1 }
  0x15   : >> { %2311 = vmatpush3.bf16.msra.mxu0 %v2654_v8  ;;  %2317 = vmatpush3.bf16.msra.mxu1 %v2635_v5  ;;  %v479_v15 = vshll.u32 %v2143_v11, 16  ;;  %v477_v18 = vshrl.u32 %v2143_v11, 16  ;;  %v639_v28 = vshll.u32 %v2156_v26, 16  ;;  %v637_v31 = vshrl.u32 %v2156_v26, 16  ;;  %v2164_v41 = vld [vmem:[%s2658_s16 + $0x8] sm:$0xf] }
  0x16   : >> { %2312 = vmatprep.mubr.msk.bf16.mxu0 %vm2562_vm2, %v2561_v4  ;;  %v340_v13 = vshrl.u32 %v2139_v12, 16  ;;  %v342_v14 = vshll.u32 %v2139_v12, 16  ;;  %2318 = vmatprep.mubr.msk.bf16.mxu1 %vm2562_vm2, %v2561_v4  ;;  %v778_v35 = vshll.u32 %v2160_v33, 16  ;;  %v776_v36 = vshrl.u32 %v2160_v33, 16  ;;  %v2170_v45 = vld [vmem:[%s2910_s2 + $0x20] sm:$0xf] }
  0x17   : >> { %2322 = vmatprep.subr.bf16.mxu0 %v2561_v4  ;;  %2328 = vmatprep.subr.bf16.mxu1 %v2561_v4  ;;  %v481_v19 = vrot.slane %v479_v15, 1  ;;  %v641_v32 = vrot.slane %v639_v28, 1  ;;  %v2741_v42 = vsel %vm246_vm0, %v2168_v38, 0  ;;  %v2744_v43 = vsel %vm246_vm0, %v2169_v39, 0  ;;  %s228_s8 = sadd.s32 1, %s2132_s29  ;;  %s2215_s12 = sshll.u32 %s2559_s6, 2 }
  0x18   : >> { %v344_v16 = vrot.slane %v342_v14, 1  ;;  %v780_v37 = vrot.slane %v778_v35, 1  ;;  %v2173_v44 = vcombine.low %v2164_v41, %v2164_v41  ;;  %v2167_v47 = vld [vmem:[%s2651_s14 + $0x8] sm:$0xf]  ;;  %v2762_v48 = vsel %vm246_vm0, %v2170_v45, 0  ;;  %p229_p4 = scmp.lt.s32.totalorder %s228_s8, 13  ;;  %s2005_s13 = scalar_lea.vmem %s2619_s5, %s2215_s12 }
  0x19   : >> { %v482_v22 = vor.u32 %v481_v19, %v477_v18  ;;  %v642_v34 = vor.u32 %v641_v32, %v637_v31  ;;  %v2177_v51 = vcombine.low %v2167_v47, %v2167_v47  ;;  %vm2006_vm7 = vcmask 125952   ;;  %s226_s6 = sadd.s32 1, %s2559_s6  }
  0x1a   : >> { %v345_v17 = vor.u32 %v344_v16, %v340_v13  ;;  %v781_v40 = vor.u32 %v780_v37, %v776_v36  ;;  %v939_v46 = vshll.u32 %v2173_v44, 16  ;;  %v937_v49 = vshrl.u32 %v2173_v44, 16  ;;  %s2916_s8 = smov (!%p229_p4, %s228_s8), 13  ;;  %p223_p5 = scmp.ge.s32.totalorder %s226_s6, 7  }
  0x1b   : >> { %v1078_v53 = vshll.u32 %v2177_v51, 16  ;;  %s2181_s9 = sshll.u32 %s2916_s8, 2  ;;  %v1076_v54 = vshrl.u32 %v2177_v51, 16  ;;  %vm2007_vm8 = vsmask.f32 3328 }
  0x1c   : >> { %2313 = vmatmul.mubr.msk.bf16.vlgmr.msra.gmra.mxu0 %vm242_vm1, %v345_v17  ;;  %2319 = vmatmul.mubr.msk.bf16.vlgmr.msra.gmra.mxu1 %vm242_vm1, %v345_v17  ;;  %v941_v50 = vrot.slane %v939_v46, 1  ;;  %s2783_s10 = scalar_lea.vmem %s2609_s25, %s2181_s9  ;;  %s2797_s11 = scalar_lea.vmem %s2614_s28, %s2181_s9  ;;  %vm2008_vm9 = vmand %vm2006_vm7, %vm2007_vm8 }
  0x1d   : >> { %2323 = vmatpush3.bf16.msra.mxu0 %v2638_v6  ;;  %2329 = vmatpush3.bf16.msra.mxu1 %v2654_v8  ;;  %v1080_v55 = vrot.slane %v1078_v53, 1  ;;  %v1144_v57 = vld [vmem:[%s2783_s10] sm:$0xf]  ;;  %v2192_v10 = vld [vmem:[%s2783_s10 + $0x4] sm:$0xf] }
  0x1e   : >> { %2324 = vmatprep.mubr.msk.bf16.mxu0 %vm2562_vm2, %v2561_v4  ;;  %2330 = vmatprep.mubr.msk.bf16.mxu1 %vm2562_vm2, %v2561_v4  ;;  %v942_v52 = vor.u32 %v941_v50, %v937_v49  ;;  %v2185_v58 = vcombine.low %v1144_v57, %v1144_v57  ;;  %v1147_v60 = vld [vmem:[%s2797_s11] sm:$0xf]  ;;  %v2194_v11 = vld [vmem:[%s2797_s11 + $0x4] sm:$0xf]  ;;  %v2204_v20 = vld [vmem:[%s2783_s10 + $0x8] sm:$0xf] }
  0x1f   : >> { %2334 = vmatprep.subr.bf16.mxu0 %v2561_v4  ;;  %2340 = vmatprep.subr.bf16.mxu1 %v2561_v4  ;;  %v1081_v56 = vor.u32 %v1080_v55, %v1076_v54  ;;  %v2189_v61 = vcombine.low %v1147_v60, %v1147_v60  ;;  %v2201_v14 = vcombine.low %v2194_v11, %v2194_v11 }
  0x20   : >> { %v1240_v59 = vshll.u32 %v2185_v58, 16  ;;  %v1238_v62 = vshrl.u32 %v2185_v58, 16  ;;  %v2209_v21 = vcombine.low %v2204_v20, %v2204_v20 }
  0x21   : >> { %v1374_v2 = vshll.u32 %v2189_v61, 16  ;;  %v1372_v7 = vshrl.u32 %v2189_v61, 16  ;;  %v1659_v16 = vshll.u32 %v2201_v14, 16  ;;  %v1657_v17 = vshrl.u32 %v2201_v14, 16 }
  0x22   : >> { %v1242_v63 = vrot.slane %v1240_v59, 1 }
  0x23   : >> { %v1661_v18 = vrot.slane %v1659_v16, 1 }
  0x24   : >> { %2325 = vmatmul.mubr.msk.bf16.vlgmr.msra.gmra.mxu0 %vm242_vm1, %v236_v9  ;;  %2331 = vmatmul.mubr.msk.bf16.vlgmr.msra.gmra.mxu1 %vm242_vm1, %v482_v22  ;;  %v1243_v3 = vor.u32 %v1242_v63, %v1238_v62  ;;  %v1376_v9 = vrot.slane %v1374_v2, 1  ;;  %v1808_v22 = vshll.u32 %v2209_v21, 16 }
  0x25   : >> { %2335 = vmatpush3.bf16.msra.mxu0 %v2691_v24  ;;  %2341 = vmatpush3.bf16.msra.mxu1 %v2694_v25  ;;  %v1662_v19 = vor.u32 %v1661_v18, %v1657_v17 }
  0x26   : >> { %2336 = vmatprep.mubr.msk.bf16.mxu0 %vm2562_vm2, %v2561_v4  ;;  %2342 = vmatprep.mubr.msk.bf16.mxu1 %vm2562_vm2, %v2561_v4 }
  0x27   : >> { %2346 = vmatprep.subr.bf16.mxu0 %v2561_v4  ;;  %2352 = vmatprep.subr.bf16.mxu1 %v2561_v4 }
  0x2c   : >> { %2337 = vmatmul.mubr.msk.bf16.vlgmr.msra.gmra.mxu0 %vm242_vm1, %v2147_v23  ;;  %2343 = vmatmul.mubr.msk.bf16.vlgmr.msra.gmra.mxu1 %vm242_vm1, %v2150_v29  ;;  %v2206_v23 = vld [vmem:[%s2797_s11 + $0x8] sm:$0xf] }
  0x2d   : >> { %2347 = vmatpush3.bf16.msra.mxu0 %v2711_v30  ;;  %2353 = vmatpush3.bf16.msra.mxu1 %v2691_v24  ;;  %v2213_v26 = vcombine.low %v2206_v23, %v2206_v23 }
  0x2e   : >> { %2348 = vmatprep.mubr.msk.bf16.mxu0 %vm2562_vm2, %v2561_v4  ;;  %2354 = vmatprep.mubr.msk.bf16.mxu1 %vm2562_vm2, %v2561_v4 }
  0x2f   : >> { %2358 = vmatprep.subr.bf16.mxu0 %v2561_v4  ;;  %2364 = vmatprep.subr.bf16.mxu1 %v2561_v4  ;;  %v1944_v28 = vshll.u32 %v2213_v26, 16 }
  0x34   : >> { %2349 = vmatmul.mubr.msk.bf16.vlgmr.msra.gmra.mxu0 %vm242_vm1, %v642_v34  ;;  %2355 = vmatmul.mubr.msk.bf16.vlgmr.msra.gmra.mxu1 %vm242_vm1, %v2150_v29  ;;  %v1942_v29 = vshrl.u32 %v2213_v26, 16 }
  0x35   : >> { %2359 = vmatpush3.bf16.msra.mxu0 %v2694_v25  ;;  %2365 = vmatpush3.bf16.msra.mxu1 %v2711_v30 }
  0x36   : >> { %2360 = vmatprep.mubr.msk.bf16.mxu0 %vm2562_vm2, %v2561_v4  ;;  %2366 = vmatprep.mubr.msk.bf16.mxu1 %vm2562_vm2, %v2561_v4 }
  0x37   : >> { %2370 = vmatprep.subr.bf16.mxu0 %v2561_v4  ;;  %2376 = vmatprep.subr.bf16.mxu1 %v2561_v4 }
  0x3c   : >> { %2361 = vmatmul.mubr.msk.bf16.vlgmr.msra.gmra.mxu0 %vm242_vm1, %v642_v34  ;;  %2367 = vmatmul.mubr.msk.bf16.vlgmr.msra.gmra.mxu1 %vm242_vm1, %v781_v40 }
  0x3d   : >> { %2371 = vmatpush3.bf16.msra.mxu0 %v2741_v42  ;;  %2377 = vmatpush3.bf16.msra.mxu1 %v2744_v43 }
  0x3e   : >> { %2372 = vmatprep.mubr.msk.bf16.mxu0 %vm2562_vm2, %v2561_v4  ;;  %2378 = vmatprep.mubr.msk.bf16.mxu1 %vm2562_vm2, %v2561_v4 }
  0x3f   : >> { %2382 = vmatprep.subr.bf16.mxu0 %v2561_v4  ;;  %2388 = vmatprep.subr.bf16.mxu1 %v2561_v4 }
  0x44   : >> { %2373 = vmatmul.mubr.msk.bf16.vlgmr.msra.gmra.mxu0 %vm242_vm1, %v2164_v41  ;;  %2379 = vmatmul.mubr.msk.bf16.vlgmr.msra.gmra.mxu1 %vm242_vm1, %v2167_v47 }
  0x45   : >> { %2383 = vmatpush3.bf16.msra.mxu0 %v2762_v48  ;;  %2389 = vmatpush3.bf16.msra.mxu1 %v2741_v42 }
  0x46   : >> { %2384 = vmatprep.mubr.msk.bf16.mxu0 %vm2562_vm2, %v2561_v4  ;;  %2390 = vmatprep.mubr.msk.bf16.mxu1 %vm2562_vm2, %v2561_v4 }
  0x47   : >> { %2394 = vmatprep.subr.bf16.mxu0 %v2561_v4  ;;  %2400 = vmatprep.subr.bf16.mxu1 %v2561_v4 }
  0x4c   : >> { %2385 = vmatmul.mubr.msk.bf16.vlgmr.msra.gmra.mxu0 %vm242_vm1, %v942_v52  ;;  %2391 = vmatmul.mubr.msk.bf16.vlgmr.msra.gmra.mxu1 %vm242_vm1, %v2167_v47 }
  0x4d   : >> { %2395 = vmatpush3.bf16.msra.mxu0 %v2744_v43  ;;  %2401 = vmatpush3.bf16.msra.mxu1 %v2762_v48 }
  0x4e   : >> { %2396 = vmatprep.mubr.msk.bf16.mxu0 %vm2562_vm2, %v2561_v4  ;;  %2402 = vmatprep.mubr.msk.bf16.mxu1 %vm2562_vm2, %v2561_v4 }
  0x4f   : >> { %2406 = vmatprep.subr.bf16.mxu0 %v2561_v4  ;;  %2412 = vmatprep.subr.bf16.mxu1 %v2561_v4 }
  0x54   : >> { %2397 = vmatmul.mubr.msk.bf16.vlgmr.msra.gmra.mxu0 %vm242_vm1, %v942_v52  ;;  %2403 = vmatmul.mubr.msk.bf16.vlgmr.msra.gmra.mxu1 %vm242_vm1, %v1081_v56 }
  0x55   : >> { %2407 = vmatpush3.bf16.msra.mxu0 %v2635_v5  ;;  %2413 = vmatpush3.bf16.msra.mxu1 %v2638_v6 }
  0x56   : >> { %2408 = vmatprep.mubr.msk.bf16.mxu0 %vm2562_vm2, %v2561_v4  ;;  %2414 = vmatprep.mubr.msk.bf16.mxu1 %vm2562_vm2, %v2561_v4 }
  0x57   : >> { %2418 = vmatprep.subr.bf16.mxu0 %v2561_v4  ;;  %2424 = vmatprep.subr.bf16.mxu1 %v2561_v4 }
  0x5c   : >> { %2409 = vmatmul.mubr.msk.bf16.vlgmr.msra.gmra.mxu0 %vm242_vm1, %v1147_v60  ;;  %2415 = vmatmul.mubr.msk.bf16.vlgmr.msra.gmra.mxu1 %vm242_vm1, %v1144_v57 }
  0x5d   : >> { %2419 = vmatpush3.bf16.msra.mxu0 %v2654_v8  ;;  %2425 = vmatpush3.bf16.msra.mxu1 %v2635_v5  ;;  %v1377_v5 = vor.u32 %v1376_v9, %v1372_v7 }
  0x5e   : >> { %2420 = vmatprep.mubr.msk.bf16.mxu0 %vm2562_vm2, %v2561_v4  ;;  %2426 = vmatprep.mubr.msk.bf16.mxu1 %vm2562_vm2, %v2561_v4 }
  0x5f   : >> { %2430 = vmatprep.subr.bf16.mxu0 %v2561_v4  ;;  %2436 = vmatprep.subr.bf16.mxu1 %v2561_v4 }
  0x64   : >> { %2421 = vmatmul.mubr.msk.bf16.vlgmr.msra.gmra.mxu0 %vm242_vm1, %v1243_v3  ;;  %2427 = vmatmul.mubr.msk.bf16.vlgmr.msra.gmra.mxu1 %vm242_vm1, %v1243_v3 }
  0x65   : >> { %2431 = vmatpush3.bf16.msra.mxu0 %v2638_v6  ;;  %2437 = vmatpush3.bf16.msra.mxu1 %v2654_v8  ;;  %v2197_v6 = vcombine.low %v2192_v10, %v2192_v10 }
  0x66   : >> { %2432 = vmatprep.mubr.msk.bf16.mxu0 %vm2562_vm2, %v2561_v4  ;;  %2438 = vmatprep.mubr.msk.bf16.mxu1 %vm2562_vm2, %v2561_v4 }
  0x67   : >> { %2442 = vmatprep.subr.bf16.mxu0 %v2561_v4  ;;  %2448 = vmatprep.subr.bf16.mxu1 %v2561_v4  ;;  %v1523_v8 = vshll.u32 %v2197_v6, 16  ;;  %v1521_v12 = vshrl.u32 %v2197_v6, 16 }
  0x69   : >> { %v1525_v13 = vrot.slane %v1523_v8, 1 }
  0x6b   : >> { %v1526_v15 = vor.u32 %v1525_v13, %v1521_v12 }
  0x6c   : >> { %2433 = vmatmul.mubr.msk.bf16.vlgmr.msra.gmra.mxu0 %vm242_vm1, %v1147_v60  ;;  %2439 = vmatmul.mubr.msk.bf16.vlgmr.msra.gmra.mxu1 %vm242_vm1, %v1377_v5 }
  0x6d   : >> { %2443 = vmatpush3.bf16.msra.mxu0 %v2691_v24  ;;  %2449 = vmatpush3.bf16.msra.mxu1 %v2694_v25 }
  0x6e   : >> { %2444 = vmatprep.mubr.msk.bf16.mxu0 %vm2562_vm2, %v2561_v4  ;;  %2450 = vmatprep.mubr.msk.bf16.mxu1 %vm2562_vm2, %v2561_v4 }
  0x6f   : >> { %2454 = vmatprep.subr.bf16.mxu0 %v2561_v4  ;;  %2460 = vmatprep.subr.bf16.mxu1 %v2561_v4 }
  0x74   : >> { %2445 = vmatmul.mubr.msk.bf16.vlgmr.msra.gmra.mxu0 %vm242_vm1, %v2192_v10  ;;  %2451 = vmatmul.mubr.msk.bf16.vlgmr.msra.gmra.mxu1 %vm242_vm1, %v2194_v11 }
  0x75   : >> { %2455 = vmatpush3.bf16.msra.mxu0 %v2711_v30  ;;  %2461 = vmatpush3.bf16.msra.mxu1 %v2691_v24  ;;  %v1806_v24 = vshrl.u32 %v2209_v21, 16 }
  0x76   : >> { %2456 = vmatprep.mubr.msk.bf16.mxu0 %vm2562_vm2, %v2561_v4  ;;  %2462 = vmatprep.mubr.msk.bf16.mxu1 %vm2562_vm2, %v2561_v4 }
  0x77   : >> { %2466 = vmatprep.subr.bf16.mxu0 %v2561_v4  ;;  %2472 = vmatprep.subr.bf16.mxu1 %v2561_v4 }
  0x7c   : >> { %2457 = vmatmul.mubr.msk.bf16.vlgmr.msra.gmra.mxu0 %vm242_vm1, %v1526_v15  ;;  %2463 = vmatmul.mubr.msk.bf16.vlgmr.msra.gmra.mxu1 %vm242_vm1, %v2194_v11 }
  0x7d   : >> { %2467 = vmatpush3.bf16.msra.mxu0 %v2694_v25  ;;  %2473 = vmatpush3.bf16.msra.mxu1 %v2711_v30  ;;  %v1810_v25 = vrot.slane %v1808_v22, 1  ;;  %v1946_v30 = vrot.slane %v1944_v28, 1 }
  0x7e   : >> { %2468 = vmatprep.mubr.msk.bf16.mxu0 %vm2562_vm2, %v2561_v4  ;;  %2474 = vmatprep.mubr.msk.bf16.mxu1 %vm2562_vm2, %v2561_v4 }
  0x7f   : >> { %2478 = vmatprep.subr.bf16.mxu0 %v2561_v4  ;;  %2484 = vmatprep.subr.bf16.mxu1 %v2561_v4  ;;  %v1811_v27 = vor.u32 %v1810_v25, %v1806_v24  ;;  %v1947_v31 = vor.u32 %v1946_v30, %v1942_v29 }
  0x84   : >> { %2469 = vmatmul.mubr.msk.bf16.vlgmr.msra.gmra.mxu0 %vm242_vm1, %v1526_v15  ;;  %2475 = vmatmul.mubr.msk.bf16.vlgmr.msra.gmra.mxu1 %vm242_vm1, %v1662_v19 }
  0x85   : >> { %2479 = vmatpush3.bf16.msra.mxu0 %v2741_v42  ;;  %2485 = vmatpush3.bf16.msra.mxu1 %v2744_v43 }
  0x86   : >> { %2480 = vmatprep.mubr.msk.bf16.mxu0 %vm2562_vm2, %v2561_v4  ;;  %2486 = vmatprep.mubr.msk.bf16.mxu1 %vm2562_vm2, %v2561_v4 }
  0x87   : >> { %2490 = vmatprep.subr.bf16.mxu0 %v2561_v4  ;;  %2496 = vmatprep.subr.bf16.mxu1 %v2561_v4 }
  0x8c   : >> { %2481 = vmatmul.mubr.msk.bf16.vlgmr.msra.gmra.mxu0 %vm242_vm1, %v2204_v20  ;;  %2487 = vmatmul.mubr.msk.bf16.vlgmr.msra.gmra.mxu1 %vm242_vm1, %v2206_v23 }
  0x8d   : >> { %2491 = vmatpush3.bf16.msra.mxu0 %v2762_v48  ;;  %2497 = vmatpush3.bf16.msra.mxu1 %v2741_v42 }
  0x8e   : >> { %2492 = vmatprep.mubr.msk.bf16.mxu0 %vm2562_vm2, %v2561_v4  ;;  %2498 = vmatprep.mubr.msk.bf16.mxu1 %vm2562_vm2, %v2561_v4 }
  0x8f   : >> { %2502 = vmatprep.subr.bf16.mxu0 %v2561_v4  ;;  %2508 = vmatprep.subr.bf16.mxu1 %v2561_v4 }
  0x94   : >> { %2493 = vmatmul.mubr.msk.bf16.vlgmr.msra.gmra.mxu0 %vm242_vm1, %v1811_v27  ;;  %2499 = vmatmul.mubr.msk.bf16.vlgmr.msra.gmra.mxu1 %vm242_vm1, %v2206_v23 }
  0x95   : >> { %2503 = vmatpush3.bf16.msra.mxu0 %v2744_v43  ;;  %2509 = vmatpush3.bf16.msra.mxu1 %v2762_v48 }
  0x96   : >> { %2504 = vmatprep.mubr.msk.bf16.mxu0 %vm2562_vm2, %v2561_v4  ;;  %2510 = vmatprep.mubr.msk.bf16.mxu1 %vm2562_vm2, %v2561_v4 }
  0x9c   : >> { %2505 = vmatmul.mubr.msk.bf16.vlgmr.msra.gmra.mxu0 %vm242_vm1, %v1811_v27  ;;  %2511 = vmatmul.mubr.msk.bf16.vlgmr.msra.gmra.mxu1 %vm242_vm1, %v1947_v31 }
  0xd4   : >> { %v284_v32 = vpop.f32.mrf.mxu0  ;;  %v330_v33 = vpop.f32.mrf.mxu1 }
  0xd5   : >> { %v331_v34 = vadd.f32 %v330_v33, %v284_v32 }
  0xd6   : >> { %v2302_v35 = vpop.f32.mrf.mxu0  ;;  %v2308_v36 = vpop.f32.mrf.mxu1 }
  0xd8   : >> { %v287_v37 = vpop.f32.mrf.mxu0  ;;  %v333_v38 = vpop.f32.mrf.mxu1 }
  0xda   : >> { %v2303_v39 = vpop.f32.mrf.mxu0  ;;  %v2309_v40 = vpop.f32.mrf.mxu1 }
  0xdc   : >> { %v386_v41 = vpop.f32.mrf.mxu0  ;;  %v427_v42 = vpop.f32.mrf.mxu1 }
  0xdd   : >> { %v392_v43 = vadd.f32 %v386_v41, %v331_v34 }
  0xde   : >> { %v2314_v44 = vpop.f32.mrf.mxu0  ;;  %v2320_v45 = vpop.f32.mrf.mxu1 }
  0xe0   : >> { %v389_v4 = vpop.f32.mrf.mxu0  ;;  %v430_v46 = vpop.f32.mrf.mxu1 }
  0xe2   : >> { %v2315_v47 = vpop.f32.mrf.mxu0  ;;  %v2321_v48 = vpop.f32.mrf.mxu1 }
  0xe4   : >> { %v467_v49 = vpop.f32.mrf.mxu0  ;;  %v520_v50 = vpop.f32.mrf.mxu1 }
  0xe5   : >> { %v468_v51 = vadd.f32 %v467_v49, %v427_v42 }
  0xe6   : >> { %v2326_v52 = vpop.f32.mrf.mxu0  ;;  %v2332_v53 = vpop.f32.mrf.mxu1 }
  0xe7   : >> { %v526_v54 = vadd.f32 %v520_v50, %v468_v51 }
  0xe8   : >> { %v470_v55 = vpop.f32.mrf.mxu0  ;;  %v523_v56 = vpop.f32.mrf.mxu1 }
  0xea   : >> { %v2327_v57 = vpop.f32.mrf.mxu0  ;;  %v2333_v58 = vpop.f32.mrf.mxu1 }
  0xec   : >> { %v579_v59 = vpop.f32.mrf.mxu0  ;;  %v626_v60 = vpop.f32.mrf.mxu1 }
  0xed   : >> { %v585_v61 = vadd.f32 %v579_v59, %v392_v43 }
  0xee   : >> { %v2338_v62 = vpop.f32.mrf.mxu0  ;;  %v2344_v63 = vpop.f32.mrf.mxu1 }
  0xef   : >> { %v632_v2 = vadd.f32 %v626_v60, %v585_v61 }
  0xf0   : >> { %v582_v3 = vpop.f32.mrf.mxu0  ;;  %v629_v7 = vpop.f32.mrf.mxu1 }
  0xf2   : >> { %v2339_v9 = vpop.f32.mrf.mxu0  ;;  %v2345_v5 = vpop.f32.mrf.mxu1 }
  0xf4   : >> { %v683_v10 = vpop.f32.mrf.mxu0  ;;  %v724_v6 = vpop.f32.mrf.mxu1 }
  0xf5   : >> { %v689_v8 = vadd.f32 %v683_v10, %v632_v2  ;;  %v730_v11 = vadd.f32 %v724_v6, %v526_v54 }
  0xf6   : >> { %v2350_v12 = vpop.f32.mrf.mxu0  ;;  %v2356_v13 = vpop.f32.mrf.mxu1 }
  0xf8   : >> { %v686_v14 = vpop.f32.mrf.mxu0  ;;  %v727_v15 = vpop.f32.mrf.mxu1 }
  0xfa   : >> { %v2351_v16 = vpop.f32.mrf.mxu0  ;;  %v2357_v17 = vpop.f32.mrf.mxu1 }
  0xfc   : >> { %v765_v18 = vpop.f32.mrf.mxu0  ;;  %v819_v19 = vpop.f32.mrf.mxu1 }
  0xfd   : >> { %v771_v20 = vadd.f32 %v765_v18, %v730_v11 }
  0xfe   : >> { %v2362_v21 = vpop.f32.mrf.mxu0  ;;  %v2368_v22 = vpop.f32.mrf.mxu1 }
  0xff   : >> { %v825_v23 = vadd.f32 %v819_v19, %v771_v20 }
 0x100   : >> { %v768_v24 = vpop.f32.mrf.mxu0  ;;  %v822_v25 = vpop.f32.mrf.mxu1 }
 0x102   : >> { %v2363_v26 = vpop.f32.mrf.mxu0  ;;  %v2369_v27 = vpop.f32.mrf.mxu1 }
 0x104   : >> { %v879_v28 = vpop.f32.mrf.mxu0  ;;  %v926_v29 = vpop.f32.mrf.mxu1 }
 0x105   : >> { %v885_v30 = vadd.f32 %v879_v28, %v689_v8 }
 0x106   : >> { %v2374_v31 = vpop.f32.mrf.mxu0  ;;  %v2380_v32 = vpop.f32.mrf.mxu1 }
 0x107   : >> { %v932_v33 = vadd.f32 %v926_v29, %v885_v30 }
 0x108   : >> { %v882_v34 = vpop.f32.mrf.mxu0  ;;  %v929_v35 = vpop.f32.mrf.mxu1 }
 0x10a   : >> { %v2375_v36 = vpop.f32.mrf.mxu0  ;;  %v2381_v37 = vpop.f32.mrf.mxu1 }
 0x10c   : >> { %v983_v38 = vpop.f32.mrf.mxu0  ;;  %v1024_v39 = vpop.f32.mrf.mxu1 }
 0x10d   : >> { %v2886_v40 = vadd.f32 %v983_v38, %v932_v33  ;;  %v1030_v41 = vadd.f32 %v1024_v39, %v825_v23 }
 0x10e   : >> { %v2386_v42 = vpop.f32.mrf.mxu0  ;;  %v2392_v43 = vpop.f32.mrf.mxu1 }
 0x110   : >> { %v986_v44 = vpop.f32.mrf.mxu0  ;;  %v1027_v45 = vpop.f32.mrf.mxu1 }
 0x112   : >> { %v2387_v4 = vpop.f32.mrf.mxu0  ;;  %v2393_v46 = vpop.f32.mrf.mxu1 }
 0x114   : >> { %v1065_v47 = vpop.f32.mrf.mxu0  ;;  %v1119_v48 = vpop.f32.mrf.mxu1 }
 0x115   : >> { %v1071_v49 = vadd.f32 %v1065_v47, %v1030_v41 }
 0x116   : >> { %v2398_v50 = vpop.f32.mrf.mxu0  ;;  %v2404_v51 = vpop.f32.mrf.mxu1 }
 0x117   : >> { %v2888_v52 = vadd.f32 %v1119_v48, %v1071_v49 }
 0x118   : >> { %v1068_v53 = vpop.f32.mrf.mxu0  ;;  %v1122_v54 = vpop.f32.mrf.mxu1 }
 0x11a   : >> { %v2399_v55 = vpop.f32.mrf.mxu0  ;;  %v2405_v56 = vpop.f32.mrf.mxu1 }
 0x11c   : >> { %v1185_v57 = vpop.f32.mrf.mxu0  ;;  %v1228_v58 = vpop.f32.mrf.mxu1 }
 0x11d   : >> { %v1229_v38 = vadd.f32 %v1228_v58, %v1185_v57 }
 0x11e   : >> { %v2410_v59 = vpop.f32.mrf.mxu0  ;;  %v2416_v60 = vpop.f32.mrf.mxu1 }
 0x120   : >> { %v1188_v61 = vpop.f32.mrf.mxu0  ;;  %v1231_v62 = vpop.f32.mrf.mxu1 }
 0x122   : >> { %v2411_v63 = vpop.f32.mrf.mxu0  ;;  %v2417_v2 = vpop.f32.mrf.mxu1 }
 0x124   : >> { %v1281_v3 = vpop.f32.mrf.mxu0  ;;  %v1322_v7 = vpop.f32.mrf.mxu1 }
 0x125   : >> { %v1287_v42 = vadd.f32 %v1281_v3, %v1229_v38 }
 0x126   : >> { %v2422_v9 = vpop.f32.mrf.mxu0  ;;  %v2428_v5 = vpop.f32.mrf.mxu1 }
 0x128   : >> { %v1284_v10 = vpop.f32.mrf.mxu0  ;;  %v1325_v6 = vpop.f32.mrf.mxu1 }
 0x12a   : >> { %v2423_v8 = vpop.f32.mrf.mxu0  ;;  %v2429_v11 = vpop.f32.mrf.mxu1 }
 0x12c   : >> { %v1362_v12 = vpop.f32.mrf.mxu0  ;;  %v1415_v13 = vpop.f32.mrf.mxu1 }
 0x12d   : >> { %v1363_v49 = vadd.f32 %v1362_v12, %v1322_v7 }
 0x12e   : >> { %v2434_v14 = vpop.f32.mrf.mxu0  ;;  %v2440_v15 = vpop.f32.mrf.mxu1 }
 0x12f   : >> { %v1421_v59 = vadd.f32 %v1415_v13, %v1363_v49 }
 0x130   : >> { %v1365_v16 = vpop.f32.mrf.mxu0  ;;  %v1418_v17 = vpop.f32.mrf.mxu1 }
 0x131   : >> { %v1130_v17 = vadd.f32 %v2599_v0, %v2886_v40 }
 0x132   : >> { %v2435_v18 = vpop.f32.mrf.mxu0  ;;  %v2441_v19 = vpop.f32.mrf.mxu1 }
 0x133   : >> { %v1138_v18 = vadd.f32 %v2599_v0, %v2888_v52  ;;  %vm1131_vm4 = vcmp.gt.f32.partialorder %v1130_v17, 0.0 }
 0x134   : >> { %v1466_v20 = vpop.f32.mrf.mxu0  ;;  %v1510_v21 = vpop.f32.mrf.mxu1 }
 0x135   : >> { %v1472_v45 = vadd.f32 %v1466_v20, %v1287_v42  ;;  %vm1139_vm5 = vcmp.gt.f32.partialorder %v1138_v18, 0.0 }
 0x136   : >> { %v2446_v22 = vpop.f32.mrf.mxu0  ;;  %v2452_v23 = vpop.f32.mrf.mxu1 }
 0x137   : >> { %v1516_v50 = vadd.f32 %v1510_v21, %v1472_v45 }
 0x138   : >> { %v1469_v24 = vpop.f32.mrf.mxu0  ;;  %v1513_v25 = vpop.f32.mrf.mxu1 }
 0x13a   : >> { %v2447_v26 = vpop.f32.mrf.mxu0  ;;  %v2453_v27 = vpop.f32.mrf.mxu1 }
 0x13b   : >> { %v1136_v26 = vmul.f32 %v2604_v1, %v1130_v17  ;;  %v1140_v27 = vmul.f32 %v2604_v1, %v1138_v18 }
 0x13c   : >> { %v1564_v28 = vpop.f32.mrf.mxu0  ;;  %v1605_v29 = vpop.f32.mrf.mxu1 }
 0x13d   : >> { %v1570_v54 = vadd.f32 %v1564_v28, %v1516_v50  ;;  %v1611_v61 = vadd.f32 %v1605_v29, %v1421_v59 }
 0x13e   : >> { %v2458_v30 = vpop.f32.mrf.mxu0  ;;  %v2464_v31 = vpop.f32.mrf.mxu1 }
 0x13f   : >> { %v1137_v31 = vsel %vm1131_vm4, %v1130_v17, %v1136_v26 }
 0x140   : >> { %v1567_v32 = vpop.f32.mrf.mxu0  ;;  %v1608_v33 = vpop.f32.mrf.mxu1 }
 0x141   : >> { %v1141_v32 = vsel %vm1139_vm5, %v1138_v18, %v1140_v27 }
 0x142   : >> { %v2459_v34 = vpop.f32.mrf.mxu0  ;;  %v2465_v35 = vpop.f32.mrf.mxu1 }
 0x144   : >> { %v1646_v36 = vpop.f32.mrf.mxu0  ;;  %v1700_v37 = vpop.f32.mrf.mxu1 }
 0x145   : >> { %v1652_v2 = vadd.f32 %v1646_v36, %v1611_v61 }
 0x146   : >> { %v2470_v39 = vpop.f32.mrf.mxu0  ;;  %v2476_v41 = vpop.f32.mrf.mxu1 }
 0x147   : >> { %v1706_v8 = vadd.f32 %v1700_v37, %v1652_v2  ;;  %v2009_v37 = vld [vmem:[%s2005_s13] sm:$0xf] }
 0x148   : >> { %v1649_v43 = vpop.f32.mrf.mxu0  ;;  %v1703_v44 = vpop.f32.mrf.mxu1 }
 0x14a   : >> { %v2471_v4 = vpop.f32.mrf.mxu0  ;;  %v2477_v46 = vpop.f32.mrf.mxu1 }
 0x14c   : >> { %v1751_v47 = vpop.f32.mrf.mxu0  ;;  %v1795_v48 = vpop.f32.mrf.mxu1 }
 0x14d   : >> { %v1757_v60 = vadd.f32 %v1751_v47, %v1570_v54 }
 0x14e   : >> { %v2482_v51 = vpop.f32.mrf.mxu0  ;;  %v2488_v53 = vpop.f32.mrf.mxu1 }
 0x14f   : >> { %v1801_v3 = vadd.f32 %v1795_v48, %v1757_v60 }
 0x150   : >> { %v1754_v55 = vpop.f32.mrf.mxu0  ;;  %v1798_v56 = vpop.f32.mrf.mxu1 }
 0x152   : >> { %v2483_v57 = vpop.f32.mrf.mxu0  ;;  %v2489_v58 = vpop.f32.mrf.mxu1 }
 0x154   : >> { %v1849_v62 = vpop.f32.mrf.mxu0  ;;  %v1890_v63 = vpop.f32.mrf.mxu1 }
 0x155   : >> { %v1855_v10 = vadd.f32 %v1849_v62, %v1801_v3  ;;  %v1896_v15 = vadd.f32 %v1890_v63, %v1706_v8 }
 0x156   : >> { %v2494_v9 = vpop.f32.mrf.mxu0  ;;  %v2500_v5 = vpop.f32.mrf.mxu1 }
 0x157   : >> { %v1992_v14 = vadd.f32 %v2599_v0, %v1855_v10 }
 0x158   : >> { %v1852_v6 = vpop.f32.mrf.mxu0  ;;  %v1893_v7 = vpop.f32.mrf.mxu1 }
 0x159   : >> { %v1994_v22 = vmul.f32 %v2604_v1, %v1992_v14  ;;  %vm1993_vm3 = vcmp.gt.f32.partialorder %v1992_v14, 0.0 }
 0x15a   : >> { %v2495_v11 = vpop.f32.mrf.mxu0  ;;  %v2501_v12 = vpop.f32.mrf.mxu1 }
 0x15b   : >> { %v1995_v29 = vsel %vm1993_vm3, %v1992_v14, %v1994_v22 }
 0x15c   : >> { %v1931_v13 = vpop.f32.mrf.mxu0  ;;  %v1985_v16 = vpop.f32.mrf.mxu1  ;;  %v2000_v34 = vmax.f32 %v1137_v31, %v1995_v29 }
 0x15d   : >> { %v1937_v19 = vadd.f32 %v1931_v13, %v1896_v15 }
 0x15e   : >> { %v2506_v20 = vpop.f32.mrf.mxu0  ;;  %v2512_v21 = vpop.f32.mrf.mxu1 }
 0x15f   : >> { %v1991_v23 = vadd.f32 %v1985_v16, %v1937_v19 }
 0x160   : >> { %v1934_v24 = vpop.f32.mrf.mxu0  ;;  %v1988_v25 = vpop.f32.mrf.mxu1 }
 0x161   : >> { %v1996_v40 = vadd.f32 %v2599_v0, %v1991_v23 }
 0x162   : >> { %v2507_v52 = vpop.f32.mrf.mxu0  ;;  %v2513_v28 = vpop.f32.mrf.mxu1 }
 0x163   : >> { %vm1997_vm6 = vcmp.gt.f32.partialorder %v1996_v40, 0.0  ;;  %v1998_v30 = vmul.f32 %v2604_v1, %v1996_v40 }
 0x165   : >> { %v1999_v33 = vsel %vm1997_vm6, %v1996_v40, %v1998_v30 }
 0x166   : >> { %v2001_v35 = vmax.f32 %v1141_v32, %v1999_v33 }
 0x168   : >> { %v2002_v36 = vmax.f32 %v2000_v34, %v2001_v35 }
 0x169   : > { %225 = sbr.rel (!%p223_p5) target bundleno = 15 (0xf), region = 97 }
 0x16a   : >> { %v2003_v38 = vpack.c.bf16 %v2002_v36, %v2002_v36 }
 0x16c   : >> { %v2010_v39 = vsel %vm2008_vm9, %v2003_v38, %v2009_v37 }
 0x16d   : >> { %2011 = vst [vmem:[%s2005_s13] sm:$0xf] %v2010_v39 }
 0x16e PF: > { %s14_s15 = sadd.s32 1, %s2555_s15  }
 0x16f   : > { %p11_p6 = scmp.ge.s32.totalorder %s14_s15, 4  }
 0x171   :  { %13 = sbr.rel (!%p11_p6) target bundleno = 1 (0x1), region = 108 }

</bundles_post_ra>
